<compile_context>
chip_gen: v7x
topology: tpu7x:2x2x1
jax: 0.10.0
libtpu: 0.0.40
codegen_flags: <defaults>
</compile_context>

<pallas_src>
import functools

import jax
import jax.numpy as jnp
from jax.experimental import pallas as pl
from jax.experimental.pallas import tpu as pltpu


def _sigmoid(x):
    # exp and approx reciprocal both run on the EUP slot (VPU divide avoided).
    return pl.reciprocal(1.0 + jnp.exp(-x), approx=True)


def _gates_full(pre, H):
    """Full-width activations on the (B, 4H) pre-activations, then slice.

    Returns (i, f, g, o) in PyTorch gate order.
    """
    sig = _sigmoid(pre)     # one EUP pass over all 4H lanes
    th = jnp.tanh(pre)      # one EUP pass over all 4H lanes
    i = sig[:, 0 * H:1 * H]
    f = sig[:, 1 * H:2 * H]
    g = th[:, 2 * H:3 * H]
    o = sig[:, 3 * H:4 * H]
    return i, f, g, o


def _cell_update(pre, c, H):
    """Standard LSTM cell state update from pre-activations."""
    i, f, g, o = _gates_full(pre, H)
    c_new = f * c + i * g
    h_new = o * jnp.tanh(c_new)
    return h_new, c_new


def _cell_update_zero(pre, H):
    """LSTM cell update when h = c = 0: f*c drops out, no recurrent matmul."""
    i, _, g, o = _gates_full(pre, H)
    c_new = i * g
    h_new = o * jnp.tanh(c_new)
    return h_new, c_new


def _vae_kernel(T, B, H, L,
                # data
                smiles_ref, struct_ref, eps_ref,
                # encoder LSTM
                e_wih0_ref, e_whh0_ref, e_b0_ref,
                e_wcat1_ref, e_b1_ref,
                # encoder FCs
                fs_w_ref, fs_b_ref,
                mulv_w_ref, mulv_b_ref,
                # decoder
                fc1_w_ref, fc1_b_ref,
                d_wih0_ref, d_b0_ref,
                d_wih1_ref, d_b1_ref,
                fc2_w_ref, fc2_b_ref,
                # outputs
                recon_ref, mulv_ref):
    f32 = jnp.float32
    bf16 = jnp.bfloat16

    # ------------- Encoder layer-0 input projection (hoisted) -------------
    # One (T*B, Din) @ (Din, 4H) MXU matmul, bias folded in once.
    xp0 = (jnp.dot(smiles_ref[...], e_wih0_ref[...],
                   preferred_element_type=f32) + e_b0_ref[...])      # (T*B, 4H)

    e_whh0 = e_whh0_ref[...]          # (H, 4H)  bf16
    e_wcat1 = e_wcat1_ref[...]        # (2H, 4H) bf16  [W_ih1 ; W_hh1]
    e_b1 = e_b1_ref[...]              # (1, 4H)  f32
    e_wih1 = e_wcat1[:H, :]           # (H, 4H)  input->gates part of layer 1

    # ------------- t = 0: all states zero -> skip recurrent matmuls -------
    h0, c0 = _cell_update_zero(xp0[0:B, :], H)
    pre1 = jnp.dot(h0.astype(bf16), e_wih1, preferred_element_type=f32) + e_b1
    h1, c1 = _cell_update_zero(pre1, H)

    # ------------- t = 1 .. T-1 (T small & static -> unrolled) ------------
    for t in range(1, T):
        pre0 = (xp0[t * B:(t + 1) * B, :]
                + jnp.dot(h0.astype(bf16), e_whh0, preferred_element_type=f32))
        h0, c0 = _cell_update(pre0, c0, H)
        hh = jnp.concatenate([h0, h1], axis=-1).astype(bf16)        # (B, 2H)
        pre1 = jnp.dot(hh, e_wcat1, preferred_element_type=f32) + e_b1
        h1, c1 = _cell_update(pre1, c1, H)
    # h1 == h[-1] of the PyTorch encoder LSTM (last layer, last timestep)

    # ------------- struct branch + fused mu | logvar -----------------------
    struct = struct_ref[...]                                         # bf16
    struct_h = jnp.maximum(
        jnp.dot(struct, fs_w_ref[...], preferred_element_type=f32)
        + fs_b_ref[...], 0.0)                                        # (B, H) f32

    hs = jnp.concatenate([h1, struct_h], axis=-1).astype(bf16)       # (B, 2H)
    mulv = (jnp.dot(hs, mulv_w_ref[...], preferred_element_type=f32)
            + mulv_b_ref[...])                                       # (B, 2L)
    mulv_ref[...] = mulv

    mu = mulv[:, :L]
    logvar = mulv[:, L:]

    # ------------- Reparameterization --------------------------------------
    z = mu + eps_ref[...] * jnp.exp(0.5 * logvar)

    # ------------- Decoder --------------------------------------------------
    # fc1(cat([z, struct])) -> (B, H)
    zs = jnp.concatenate([z.astype(bf16), struct], axis=-1)          # (B, L+Sin)
    x1 = (jnp.dot(zs, fc1_w_ref[...], preferred_element_type=f32)
          + fc1_b_ref[...])

    # Decoder LSTM: seq len 1, zero initial state -> two zero-state cells;
    # the hidden-to-hidden weights drop out entirely.
    pre_d0 = (jnp.dot(x1.astype(bf16), d_wih0_ref[...],
                      preferred_element_type=f32) + d_b0_ref[...])
    dh0, _ = _cell_update_zero(pre_d0, H)
    pre_d1 = (jnp.dot(dh0.astype(bf16), d_wih1_ref[...],
                      preferred_element_type=f32) + d_b1_ref[...])
    dh1, _ = _cell_update_zero(pre_d1, H)

    recon_ref[...] = _sigmoid(
        jnp.dot(dh1.astype(bf16), fc2_w_ref[...], preferred_element_type=f32)
        + fc2_b_ref[...])


def init_vae_params(key, smiles_in, struct_in, hidden, latent, out_size):
    """Deterministic PyTorch-style uniform(-1/sqrt(fan), 1/sqrt(fan)) init.

    Returns a dict of kernel-ready (transposed / fused / bias-summed / bf16)
    arrays.
    """
    H = hidden
    keys = iter(jax.random.split(key, 64))
    bf16 = jnp.bfloat16

    def unif(shape, fan_in):
        bound = 1.0 / float(fan_in) ** 0.5
        return jax.random.uniform(next(keys), shape, jnp.float32, -bound, bound)

    def lstm_layer(in_dim):
        w_ih = unif((4 * H, in_dim), H)
        w_hh = unif((4 * H, H), H)
        b_ih = unif((4 * H,), H)
        b_hh = unif((4 * H,), H)
        return w_ih, w_hh, b_ih, b_hh

    # Encoder LSTM (smiles_in -> H, 2 layers)
    e_wih0, e_whh0, e_bih0, e_bhh0 = lstm_layer(smiles_in)
    e_wih1, e_whh1, e_bih1, e_bhh1 = lstm_layer(H)

    # fc_struct: (H, struct_in)
    fs_w = unif((H, struct_in), struct_in)
    fs_b = unif((H,), struct_in)

    # fc_mu / fc_logvar: (latent, 2H), fused along the output dim
    mu_w = unif((latent, 2 * H), 2 * H)
    mu_b = unif((latent,), 2 * H)
    lv_w = unif((latent, 2 * H), 2 * H)
    lv_b = unif((latent,), 2 * H)

    # Decoder fc1: (H, latent + struct_in)
    fc1_w = unif((H, latent + struct_in), latent + struct_in)
    fc1_b = unif((H,), latent + struct_in)

    # Decoder LSTM (H -> H, 2 layers). W_hh is unused in the kernel (zero
    # initial state, seq len 1) but the biases still contribute.
    d_wih0, _d_whh0, d_bih0, d_bhh0 = lstm_layer(H)
    d_wih1, _d_whh1, d_bih1, d_bhh1 = lstm_layer(H)

    # fc2: (out_size, H)
    fc2_w = unif((out_size, H), H)
    fc2_b = unif((out_size,), H)

    return {
        "H": H, "latent": latent, "out_size": out_size,
        # encoder layer 0
        "e_wih0": e_wih0.T.astype(bf16),                       # (Din, 4H)
        "e_whh0": e_whh0.T.astype(bf16),                       # (H, 4H)
        "e_b0": (e_bih0 + e_bhh0).reshape(1, 4 * H),           # f32
        # encoder layer 1, fused [W_ih.T ; W_hh.T]
        "e_wcat1": jnp.concatenate([e_wih1.T, e_whh1.T], axis=0).astype(bf16),
        "e_b1": (e_bih1 + e_bhh1).reshape(1, 4 * H),
        # fc_struct
        "fs_w": fs_w.T.astype(bf16),                           # (Sin, H)
        "fs_b": fs_b.reshape(1, H),
        # fused fc_mu | fc_logvar : [h1, struct_h] @ W -> [mu | logvar]
        "mulv_w": jnp.concatenate([mu_w.T, lv_w.T], axis=1).astype(bf16),
        "mulv_b": jnp.concatenate([mu_b, lv_b]).reshape(1, 2 * latent),
        # decoder fc1 over cat([z, struct])
        "fc1_w": fc1_w.T.astype(bf16),                         # (L+Sin, H)
        "fc1_b": fc1_b.reshape(1, H),
        # decoder LSTM (zero state -> only W_ih + summed bias)
        "d_wih0": d_wih0.T.astype(bf16),                       # (H, 4H)
        "d_b0": (d_bih0 + d_bhh0).reshape(1, 4 * H),
        "d_wih1": d_wih1.T.astype(bf16),                       # (H, 4H)
        "d_b1": (d_bih1 + d_bhh1).reshape(1, 4 * H),
        # fc2
        "fc2_w": fc2_w.T.astype(bf16),                         # (H, out)
        "fc2_b": fc2_b.reshape(1, out_size),
    }


def vae_forward(smiles, struct_fp, eps, params):
    """smiles: (B, T, smiles_in)  struct_fp: (B, struct_in)  eps: (B, latent)."""
    B, T, Din = smiles.shape
    H = params["H"]
    L = params["latent"]
    out_size = params["out_size"]

    # Time-major, flattened so the layer-0 projection is one matmul.
    smiles_flat = (jnp.transpose(smiles, (1, 0, 2))
                   .reshape(T * B, Din).astype(jnp.bfloat16))
    struct_bf = struct_fp.astype(jnp.bfloat16)
    eps_f32 = eps.astype(jnp.float32)

    inputs = [
        smiles_flat, struct_bf, eps_f32,
        params["e_wih0"], params["e_whh0"], params["e_b0"],
        params["e_wcat1"], params["e_b1"],
        params["fs_w"], params["fs_b"],
        params["mulv_w"], params["mulv_b"],
        params["fc1_w"], params["fc1_b"],
        params["d_wih0"], params["d_b0"],
        params["d_wih1"], params["d_b1"],
        params["fc2_w"], params["fc2_b"],
    ]

    vmem = pl.BlockSpec(memory_space=pltpu.MemorySpace.VMEM)
    out_shapes = (
        jax.ShapeDtypeStruct((B, out_size), jnp.float32),   # reconstructed_x
        jax.ShapeDtypeStruct((B, 2 * L), jnp.float32),      # packed [mu|logvar]
    )
    kernel = functools.partial(_vae_kernel, T, B, H, L)
    # TODO(synk): for large B on v7x, add a batch grid axis with
    # dimension_semantics=("parallel",) to use both TensorCores; pointless at B=2.
    recon, mulv = pl.pallas_call(
        kernel,
        out_shape=out_shapes,
        in_specs=[vmem] * len(inputs),
        out_specs=(vmem, vmem),
    )(*inputs)
    return recon, mulv[:, :L], mulv[:, L:]


if __name__ == "__main__":
    # Small shapes consistent with the module's forward.
    B, T = 2, 8
    SMILES_IN, STRUCT_IN = 16, 64
    HIDDEN, LATENT, OUT_SIZE = 32, 16, 64

    root = jax.random.PRNGKey(0)
    k_param, k_smiles, k_struct, k_eps = jax.random.split(root, 4)

    params = init_vae_params(k_param, SMILES_IN, STRUCT_IN, HIDDEN, LATENT, OUT_SIZE)

    smiles = jax.random.normal(k_smiles, (B, T, SMILES_IN), jnp.float32)
    struct_fp = (jax.random.uniform(k_struct, (B, STRUCT_IN)) > 0.5).astype(jnp.float32)
    # eps ~ N(0,1): the torch.randn_like of Reparameterization, generated
    # host-side for determinism.
    eps = jax.random.normal(k_eps, (B, LATENT), jnp.float32)

    recon, mu, logvar = vae_forward(smiles, struct_fp, eps, params)
    jax.block_until_ready((recon, mu, logvar))

    assert recon.shape == (B, OUT_SIZE)
    assert mu.shape == (B, LATENT) and logvar.shape == (B, LATENT)
    assert bool(jnp.all(jnp.isfinite(recon))) and bool(jnp.all(jnp.isfinite(mu)))
    print("KERNEL_OK")
</pallas_src>

<mosaic_0001>
module attributes {stable_mosaic.version = 11 : i64} {
  func.func @_vae_kernel(%arg0: memref<16x16xbf16, #tpu.memory_space<vmem>>, %arg1: memref<2x64xbf16, #tpu.memory_space<vmem>>, %arg2: memref<2x16xf32, #tpu.memory_space<vmem>>, %arg3: memref<16x128xbf16, #tpu.memory_space<vmem>>, %arg4: memref<32x128xbf16, #tpu.memory_space<vmem>>, %arg5: memref<1x128xf32, #tpu.memory_space<vmem>>, %arg6: memref<64x128xbf16, #tpu.memory_space<vmem>>, %arg7: memref<1x128xf32, #tpu.memory_space<vmem>>, %arg8: memref<64x32xbf16, #tpu.memory_space<vmem>>, %arg9: memref<1x32xf32, #tpu.memory_space<vmem>>, %arg10: memref<64x32xbf16, #tpu.memory_space<vmem>>, %arg11: memref<1x32xf32, #tpu.memory_space<vmem>>, %arg12: memref<80x32xbf16, #tpu.memory_space<vmem>>, %arg13: memref<1x32xf32, #tpu.memory_space<vmem>>, %arg14: memref<32x128xbf16, #tpu.memory_space<vmem>>, %arg15: memref<1x128xf32, #tpu.memory_space<vmem>>, %arg16: memref<32x128xbf16, #tpu.memory_space<vmem>>, %arg17: memref<1x128xf32, #tpu.memory_space<vmem>>, %arg18: memref<32x64xbf16, #tpu.memory_space<vmem>>, %arg19: memref<1x64xf32, #tpu.memory_space<vmem>>, %arg20: memref<2x64xf32, #tpu.memory_space<vmem>>, %arg21: memref<2x32xf32, #tpu.memory_space<vmem>>) attributes {dimension_semantics = [], scalar_prefetch = 0 : i64, scratch_operands = 0 : i64, tpu.core_type = #tpu.core_type<tc>} {
    %c0 = arith.constant 0 : index
    %c0_0 = arith.constant 0 : index
    %0 = vector.load %arg0[%c0, %c0_0] : memref<16x16xbf16, #tpu.memory_space<vmem>>, vector<16x16xbf16>
    %c0_1 = arith.constant 0 : index
    %c0_2 = arith.constant 0 : index
    %1 = vector.load %arg3[%c0_1, %c0_2] : memref<16x128xbf16, #tpu.memory_space<vmem>>, vector<16x128xbf16>
    %cst = arith.constant dense<0.000000e+00> : vector<16x128xf32>
    %2 = tpu.matmul %0, %1, %cst {dimension_numbers = #tpu.dot_dimension_numbers<[1], [0], [0], [1], [0, 0, 1, 1], [], []>} : vector<16x16xbf16>, vector<16x128xbf16>, vector<16x128xf32> -> vector<16x128xf32>
    %c0_3 = arith.constant 0 : index
    %c0_4 = arith.constant 0 : index
    %3 = vector.load %arg5[%c0_3, %c0_4] : memref<1x128xf32, #tpu.memory_space<vmem>>, vector<1x128xf32>
    %4 = vector.broadcast %3 : vector<1x128xf32> to vector<16x128xf32>
    %5 = arith.addf %2, %4 : vector<16x128xf32>
    %c0_5 = arith.constant 0 : index
    %c0_6 = arith.constant 0 : index
    %6 = vector.load %arg4[%c0_5, %c0_6] : memref<32x128xbf16, #tpu.memory_space<vmem>>, vector<32x128xbf16>
    %c0_7 = arith.constant 0 : index
    %c0_8 = arith.constant 0 : index
    %7 = vector.load %arg6[%c0_7, %c0_8] : memref<64x128xbf16, #tpu.memory_space<vmem>>, vector<64x128xbf16>
    %c0_9 = arith.constant 0 : index
    %c0_10 = arith.constant 0 : index
    %8 = vector.load %arg7[%c0_9, %c0_10] : memref<1x128xf32, #tpu.memory_space<vmem>>, vector<1x128xf32>
    %9 = vector.extract_strided_slice %7 {offsets = [0, 0], sizes = [32, 128], strides = [1, 1]} : vector<64x128xbf16> to vector<32x128xbf16>
    %10 = vector.extract_strided_slice %5 {offsets = [0, 0], sizes = [2, 128], strides = [1, 1]} : vector<16x128xf32> to vector<2x128xf32>
    %cst_11 = arith.constant 0.000000e+00 : f32
    %11 = vector.broadcast %cst_11 : f32 to vector<2x128xf32>
    %12 = arith.subf %11, %10 : vector<2x128xf32>
    %13 = math.exp %12 : vector<2x128xf32>
    %cst_12 = arith.constant 1.000000e+00 : f32
    %14 = vector.broadcast %cst_12 : f32 to vector<2x128xf32>
    %15 = arith.addf %14, %13 : vector<2x128xf32>
    %16 = tpu.reciprocal %15 {approx = true} : vector<2x128xf32> -> vector<2x128xf32>
    %17 = math.tanh %10 : vector<2x128xf32>
    %18 = vector.extract_strided_slice %16 {offsets = [0, 0], sizes = [2, 32], strides = [1, 1]} : vector<2x128xf32> to vector<2x32xf32>
    %19 = vector.extract_strided_slice %17 {offsets = [0, 64], sizes = [2, 32], strides = [1, 1]} : vector<2x128xf32> to vector<2x32xf32>
    %20 = vector.extract_strided_slice %16 {offsets = [0, 96], sizes = [2, 32], strides = [1, 1]} : vector<2x128xf32> to vector<2x32xf32>
    %21 = arith.mulf %18, %19 : vector<2x32xf32>
    %22 = math.tanh %21 : vector<2x32xf32>
    %23 = arith.mulf %20, %22 : vector<2x32xf32>
    %24 = arith.truncf %23 : vector<2x32xf32> to vector<2x32xbf16>
    %cst_13 = arith.constant dense<0.000000e+00> : vector<2x128xf32>
    %25 = tpu.matmul %24, %9, %cst_13 {dimension_numbers = #tpu.dot_dimension_numbers<[1], [0], [0], [1], [0, 0, 1, 1], [], []>} : vector<2x32xbf16>, vector<32x128xbf16>, vector<2x128xf32> -> vector<2x128xf32>
    %26 = vector.broadcast %8 : vector<1x128xf32> to vector<2x128xf32>
    %27 = arith.addf %25, %26 : vector<2x128xf32>
    %cst_14 = arith.constant 0.000000e+00 : f32
    %28 = vector.broadcast %cst_14 : f32 to vector<2x128xf32>
    %29 = arith.subf %28, %27 : vector<2x128xf32>
    %30 = math.exp %29 : vector<2x128xf32>
    %cst_15 = arith.constant 1.000000e+00 : f32
    %31 = vector.broadcast %cst_15 : f32 to vector<2x128xf32>
    %32 = arith.addf %31, %30 : vector<2x128xf32>
    %33 = tpu.reciprocal %32 {approx = true} : vector<2x128xf32> -> vector<2x128xf32>
    %34 = math.tanh %27 : vector<2x128xf32>
    %35 = vector.extract_strided_slice %33 {offsets = [0, 0], sizes = [2, 32], strides = [1, 1]} : vector<2x128xf32> to vector<2x32xf32>
    %36 = vector.extract_strided_slice %34 {offsets = [0, 64], sizes = [2, 32], strides = [1, 1]} : vector<2x128xf32> to vector<2x32xf32>
    %37 = vector.extract_strided_slice %33 {offsets = [0, 96], sizes = [2, 32], strides = [1, 1]} : vector<2x128xf32> to vector<2x32xf32>
    %38 = arith.mulf %35, %36 : vector<2x32xf32>
    %39 = math.tanh %38 : vector<2x32xf32>
    %40 = arith.mulf %37, %39 : vector<2x32xf32>
    %41 = vector.extract_strided_slice %5 {offsets = [2, 0], sizes = [2, 128], strides = [1, 1]} : vector<16x128xf32> to vector<2x128xf32>
    %42 = arith.truncf %23 : vector<2x32xf32> to vector<2x32xbf16>
    %cst_16 = arith.constant dense<0.000000e+00> : vector<2x128xf32>
    %43 = tpu.matmul %42, %6, %cst_16 {dimension_numbers = #tpu.dot_dimension_numbers<[1], [0], [0], [1], [0, 0, 1, 1], [], []>} : vector<2x32xbf16>, vector<32x128xbf16>, vector<2x128xf32> -> vector<2x128xf32>
    %44 = arith.addf %41, %43 : vector<2x128xf32>
    %cst_17 = arith.constant 0.000000e+00 : f32
    %45 = vector.broadcast %cst_17 : f32 to vector<2x128xf32>
    %46 = arith.subf %45, %44 : vector<2x128xf32>
    %47 = math.exp %46 : vector<2x128xf32>
    %cst_18 = arith.constant 1.000000e+00 : f32
    %48 = vector.broadcast %cst_18 : f32 to vector<2x128xf32>
    %49 = arith.addf %48, %47 : vector<2x128xf32>
    %50 = tpu.reciprocal %49 {approx = true} : vector<2x128xf32> -> vector<2x128xf32>
    %51 = math.tanh %44 : vector<2x128xf32>
    %52 = vector.extract_strided_slice %50 {offsets = [0, 0], sizes = [2, 32], strides = [1, 1]} : vector<2x128xf32> to vector<2x32xf32>
    %53 = vector.extract_strided_slice %50 {offsets = [0, 32], sizes = [2, 32], strides = [1, 1]} : vector<2x128xf32> to vector<2x32xf32>
    %54 = vector.extract_strided_slice %51 {offsets = [0, 64], sizes = [2, 32], strides = [1, 1]} : vector<2x128xf32> to vector<2x32xf32>
    %55 = vector.extract_strided_slice %50 {offsets = [0, 96], sizes = [2, 32], strides = [1, 1]} : vector<2x128xf32> to vector<2x32xf32>
    %56 = arith.mulf %53, %21 : vector<2x32xf32>
    %57 = arith.mulf %52, %54 : vector<2x32xf32>
    %58 = arith.addf %56, %57 : vector<2x32xf32>
    %59 = math.tanh %58 : vector<2x32xf32>
    %60 = arith.mulf %55, %59 : vector<2x32xf32>
    %61 = tpu.concatenate %60, %40 in 1 : vector<2x32xf32>, vector<2x32xf32> -> vector<2x64xf32>
    %62 = arith.truncf %61 : vector<2x64xf32> to vector<2x64xbf16>
    %cst_19 = arith.constant dense<0.000000e+00> : vector<2x128xf32>
    %63 = tpu.matmul %62, %7, %cst_19 {dimension_numbers = #tpu.dot_dimension_numbers<[1], [0], [0], [1], [0, 0, 1, 1], [], []>} : vector<2x64xbf16>, vector<64x128xbf16>, vector<2x128xf32> -> vector<2x128xf32>
    %64 = vector.broadcast %8 : vector<1x128xf32> to vector<2x128xf32>
    %65 = arith.addf %63, %64 : vector<2x128xf32>
    %cst_20 = arith.constant 0.000000e+00 : f32
    %66 = vector.broadcast %cst_20 : f32 to vector<2x128xf32>
    %67 = arith.subf %66, %65 : vector<2x128xf32>
    %68 = math.exp %67 : vector<2x128xf32>
    %cst_21 = arith.constant 1.000000e+00 : f32
    %69 = vector.broadcast %cst_21 : f32 to vector<2x128xf32>
    %70 = arith.addf %69, %68 : vector<2x128xf32>
    %71 = tpu.reciprocal %70 {approx = true} : vector<2x128xf32> -> vector<2x128xf32>
    %72 = math.tanh %65 : vector<2x128xf32>
    %73 = vector.extract_strided_slice %71 {offsets = [0, 0], sizes = [2, 32], strides = [1, 1]} : vector<2x128xf32> to vector<2x32xf32>
    %74 = vector.extract_strided_slice %71 {offsets = [0, 32], sizes = [2, 32], strides = [1, 1]} : vector<2x128xf32> to vector<2x32xf32>
    %75 = vector.extract_strided_slice %72 {offsets = [0, 64], sizes = [2, 32], strides = [1, 1]} : vector<2x128xf32> to vector<2x32xf32>
    %76 = vector.extract_strided_slice %71 {offsets = [0, 96], sizes = [2, 32], strides = [1, 1]} : vector<2x128xf32> to vector<2x32xf32>
    %77 = arith.mulf %74, %38 : vector<2x32xf32>
    %78 = arith.mulf %73, %75 : vector<2x32xf32>
    %79 = arith.addf %77, %78 : vector<2x32xf32>
    %80 = math.tanh %79 : vector<2x32xf32>
    %81 = arith.mulf %76, %80 : vector<2x32xf32>
    %82 = vector.extract_strided_slice %5 {offsets = [4, 0], sizes = [2, 128], strides = [1, 1]} : vector<16x128xf32> to vector<2x128xf32>
    %83 = arith.truncf %60 : vector<2x32xf32> to vector<2x32xbf16>
    %cst_22 = arith.constant dense<0.000000e+00> : vector<2x128xf32>
    %84 = tpu.matmul %83, %6, %cst_22 {dimension_numbers = #tpu.dot_dimension_numbers<[1], [0], [0], [1], [0, 0, 1, 1], [], []>} : vector<2x32xbf16>, vector<32x128xbf16>, vector<2x128xf32> -> vector<2x128xf32>
    %85 = arith.addf %82, %84 : vector<2x128xf32>
    %cst_23 = arith.constant 0.000000e+00 : f32
    %86 = vector.broadcast %cst_23 : f32 to vector<2x128xf32>
    %87 = arith.subf %86, %85 : vector<2x128xf32>
    %88 = math.exp %87 : vector<2x128xf32>
    %cst_24 = arith.constant 1.000000e+00 : f32
    %89 = vector.broadcast %cst_24 : f32 to vector<2x128xf32>
    %90 = arith.addf %89, %88 : vector<2x128xf32>
    %91 = tpu.reciprocal %90 {approx = true} : vector<2x128xf32> -> vector<2x128xf32>
    %92 = math.tanh %85 : vector<2x128xf32>
    %93 = vector.extract_strided_slice %91 {offsets = [0, 0], sizes = [2, 32], strides = [1, 1]} : vector<2x128xf32> to vector<2x32xf32>
    %94 = vector.extract_strided_slice %91 {offsets = [0, 32], sizes = [2, 32], strides = [1, 1]} : vector<2x128xf32> to vector<2x32xf32>
    %95 = vector.extract_strided_slice %92 {offsets = [0, 64], sizes = [2, 32], strides = [1, 1]} : vector<2x128xf32> to vector<2x32xf32>
    %96 = vector.extract_strided_slice %91 {offsets = [0, 96], sizes = [2, 32], strides = [1, 1]} : vector<2x128xf32> to vector<2x32xf32>
    %97 = arith.mulf %94, %58 : vector<2x32xf32>
    %98 = arith.mulf %93, %95 : vector<2x32xf32>
    %99 = arith.addf %97, %98 : vector<2x32xf32>
    %100 = math.tanh %99 : vector<2x32xf32>
    %101 = arith.mulf %96, %100 : vector<2x32xf32>
    %102 = tpu.concatenate %101, %81 in 1 : vector<2x32xf32>, vector<2x32xf32> -> vector<2x64xf32>
    %103 = arith.truncf %102 : vector<2x64xf32> to vector<2x64xbf16>
    %cst_25 = arith.constant dense<0.000000e+00> : vector<2x128xf32>
    %104 = tpu.matmul %103, %7, %cst_25 {dimension_numbers = #tpu.dot_dimension_numbers<[1], [0], [0], [1], [0, 0, 1, 1], [], []>} : vector<2x64xbf16>, vector<64x128xbf16>, vector<2x128xf32> -> vector<2x128xf32>
    %105 = vector.broadcast %8 : vector<1x128xf32> to vector<2x128xf32>
    %106 = arith.addf %104, %105 : vector<2x128xf32>
    %cst_26 = arith.constant 0.000000e+00 : f32
    %107 = vector.broadcast %cst_26 : f32 to vector<2x128xf32>
    %108 = arith.subf %107, %106 : vector<2x128xf32>
    %109 = math.exp %108 : vector<2x128xf32>
    %cst_27 = arith.constant 1.000000e+00 : f32
    %110 = vector.broadcast %cst_27 : f32 to vector<2x128xf32>
    %111 = arith.addf %110, %109 : vector<2x128xf32>
    %112 = tpu.reciprocal %111 {approx = true} : vector<2x128xf32> -> vector<2x128xf32>
    %113 = math.tanh %106 : vector<2x128xf32>
    %114 = vector.extract_strided_slice %112 {offsets = [0, 0], sizes = [2, 32], strides = [1, 1]} : vector<2x128xf32> to vector<2x32xf32>
    %115 = vector.extract_strided_slice %112 {offsets = [0, 32], sizes = [2, 32], strides = [1, 1]} : vector<2x128xf32> to vector<2x32xf32>
    %116 = vector.extract_strided_slice %113 {offsets = [0, 64], sizes = [2, 32], strides = [1, 1]} : vector<2x128xf32> to vector<2x32xf32>
    %117 = vector.extract_strided_slice %112 {offsets = [0, 96], sizes = [2, 32], strides = [1, 1]} : vector<2x128xf32> to vector<2x32xf32>
    %118 = arith.mulf %115, %79 : vector<2x32xf32>
    %119 = arith.mulf %114, %116 : vector<2x32xf32>
    %120 = arith.addf %118, %119 : vector<2x32xf32>
    %121 = math.tanh %120 : vector<2x32xf32>
    %122 = arith.mulf %117, %121 : vector<2x32xf32>
    %123 = vector.extract_strided_slice %5 {offsets = [6, 0], sizes = [2, 128], strides = [1, 1]} : vector<16x128xf32> to vector<2x128xf32>
    %124 = arith.truncf %101 : vector<2x32xf32> to vector<2x32xbf16>
    %cst_28 = arith.constant dense<0.000000e+00> : vector<2x128xf32>
    %125 = tpu.matmul %124, %6, %cst_28 {dimension_numbers = #tpu.dot_dimension_numbers<[1], [0], [0], [1], [0, 0, 1, 1], [], []>} : vector<2x32xbf16>, vector<32x128xbf16>, vector<2x128xf32> -> vector<2x128xf32>
    %126 = arith.addf %123, %125 : vector<2x128xf32>
    %cst_29 = arith.constant 0.000000e+00 : f32
    %127 = vector.broadcast %cst_29 : f32 to vector<2x128xf32>
    %128 = arith.subf %127, %126 : vector<2x128xf32>
    %129 = math.exp %128 : vector<2x128xf32>
    %cst_30 = arith.constant 1.000000e+00 : f32
    %130 = vector.broadcast %cst_30 : f32 to vector<2x128xf32>
    %131 = arith.addf %130, %129 : vector<2x128xf32>
    %132 = tpu.reciprocal %131 {approx = true} : vector<2x128xf32> -> vector<2x128xf32>
    %133 = math.tanh %126 : vector<2x128xf32>
    %134 = vector.extract_strided_slice %132 {offsets = [0, 0], sizes = [2, 32], strides = [1, 1]} : vector<2x128xf32> to vector<2x32xf32>
    %135 = vector.extract_strided_slice %132 {offsets = [0, 32], sizes = [2, 32], strides = [1, 1]} : vector<2x128xf32> to vector<2x32xf32>
    %136 = vector.extract_strided_slice %133 {offsets = [0, 64], sizes = [2, 32], strides = [1, 1]} : vector<2x128xf32> to vector<2x32xf32>
    %137 = vector.extract_strided_slice %132 {offsets = [0, 96], sizes = [2, 32], strides = [1, 1]} : vector<2x128xf32> to vector<2x32xf32>
    %138 = arith.mulf %135, %99 : vector<2x32xf32>
    %139 = arith.mulf %134, %136 : vector<2x32xf32>
    %140 = arith.addf %138, %139 : vector<2x32xf32>
    %141 = math.tanh %140 : vector<2x32xf32>
    %142 = arith.mulf %137, %141 : vector<2x32xf32>
    %143 = tpu.concatenate %142, %122 in 1 : vector<2x32xf32>, vector<2x32xf32> -> vector<2x64xf32>
    %144 = arith.truncf %143 : vector<2x64xf32> to vector<2x64xbf16>
    %cst_31 = arith.constant dense<0.000000e+00> : vector<2x128xf32>
    %145 = tpu.matmul %144, %7, %cst_31 {dimension_numbers = #tpu.dot_dimension_numbers<[1], [0], [0], [1], [0, 0, 1, 1], [], []>} : vector<2x64xbf16>, vector<64x128xbf16>, vector<2x128xf32> -> vector<2x128xf32>
    %146 = vector.broadcast %8 : vector<1x128xf32> to vector<2x128xf32>
    %147 = arith.addf %145, %146 : vector<2x128xf32>
    %cst_32 = arith.constant 0.000000e+00 : f32
    %148 = vector.broadcast %cst_32 : f32 to vector<2x128xf32>
    %149 = arith.subf %148, %147 : vector<2x128xf32>
    %150 = math.exp %149 : vector<2x128xf32>
    %cst_33 = arith.constant 1.000000e+00 : f32
    %151 = vector.broadcast %cst_33 : f32 to vector<2x128xf32>
    %152 = arith.addf %151, %150 : vector<2x128xf32>
    %153 = tpu.reciprocal %152 {approx = true} : vector<2x128xf32> -> vector<2x128xf32>
    %154 = math.tanh %147 : vector<2x128xf32>
    %155 = vector.extract_strided_slice %153 {offsets = [0, 0], sizes = [2, 32], strides = [1, 1]} : vector<2x128xf32> to vector<2x32xf32>
    %156 = vector.extract_strided_slice %153 {offsets = [0, 32], sizes = [2, 32], strides = [1, 1]} : vector<2x128xf32> to vector<2x32xf32>
    %157 = vector.extract_strided_slice %154 {offsets = [0, 64], sizes = [2, 32], strides = [1, 1]} : vector<2x128xf32> to vector<2x32xf32>
    %158 = vector.extract_strided_slice %153 {offsets = [0, 96], sizes = [2, 32], strides = [1, 1]} : vector<2x128xf32> to vector<2x32xf32>
    %159 = arith.mulf %156, %120 : vector<2x32xf32>
    %160 = arith.mulf %155, %157 : vector<2x32xf32>
    %161 = arith.addf %159, %160 : vector<2x32xf32>
    %162 = math.tanh %161 : vector<2x32xf32>
    %163 = arith.mulf %158, %162 : vector<2x32xf32>
    %164 = vector.extract_strided_slice %5 {offsets = [8, 0], sizes = [2, 128], strides = [1, 1]} : vector<16x128xf32> to vector<2x128xf32>
    %165 = arith.truncf %142 : vector<2x32xf32> to vector<2x32xbf16>
    %cst_34 = arith.constant dense<0.000000e+00> : vector<2x128xf32>
    %166 = tpu.matmul %165, %6, %cst_34 {dimension_numbers = #tpu.dot_dimension_numbers<[1], [0], [0], [1], [0, 0, 1, 1], [], []>} : vector<2x32xbf16>, vector<32x128xbf16>, vector<2x128xf32> -> vector<2x128xf32>
    %167 = arith.addf %164, %166 : vector<2x128xf32>
    %cst_35 = arith.constant 0.000000e+00 : f32
    %168 = vector.broadcast %cst_35 : f32 to vector<2x128xf32>
    %169 = arith.subf %168, %167 : vector<2x128xf32>
    %170 = math.exp %169 : vector<2x128xf32>
    %cst_36 = arith.constant 1.000000e+00 : f32
    %171 = vector.broadcast %cst_36 : f32 to vector<2x128xf32>
    %172 = arith.addf %171, %170 : vector<2x128xf32>
    %173 = tpu.reciprocal %172 {approx = true} : vector<2x128xf32> -> vector<2x128xf32>
    %174 = math.tanh %167 : vector<2x128xf32>
    %175 = vector.extract_strided_slice %173 {offsets = [0, 0], sizes = [2, 32], strides = [1, 1]} : vector<2x128xf32> to vector<2x32xf32>
    %176 = vector.extract_strided_slice %173 {offsets = [0, 32], sizes = [2, 32], strides = [1, 1]} : vector<2x128xf32> to vector<2x32xf32>
    %177 = vector.extract_strided_slice %174 {offsets = [0, 64], sizes = [2, 32], strides = [1, 1]} : vector<2x128xf32> to vector<2x32xf32>
    %178 = vector.extract_strided_slice %173 {offsets = [0, 96], sizes = [2, 32], strides = [1, 1]} : vector<2x128xf32> to vector<2x32xf32>
    %179 = arith.mulf %176, %140 : vector<2x32xf32>
    %180 = arith.mulf %175, %177 : vector<2x32xf32>
    %181 = arith.addf %179, %180 : vector<2x32xf32>
    %182 = math.tanh %181 : vector<2x32xf32>
    %183 = arith.mulf %178, %182 : vector<2x32xf32>
    %184 = tpu.concatenate %183, %163 in 1 : vector<2x32xf32>, vector<2x32xf32> -> vector<2x64xf32>
    %185 = arith.truncf %184 : vector<2x64xf32> to vector<2x64xbf16>
    %cst_37 = arith.constant dense<0.000000e+00> : vector<2x128xf32>
    %186 = tpu.matmul %185, %7, %cst_37 {dimension_numbers = #tpu.dot_dimension_numbers<[1], [0], [0], [1], [0, 0, 1, 1], [], []>} : vector<2x64xbf16>, vector<64x128xbf16>, vector<2x128xf32> -> vector<2x128xf32>
    %187 = vector.broadcast %8 : vector<1x128xf32> to vector<2x128xf32>
    %188 = arith.addf %186, %187 : vector<2x128xf32>
    %cst_38 = arith.constant 0.000000e+00 : f32
    %189 = vector.broadcast %cst_38 : f32 to vector<2x128xf32>
    %190 = arith.subf %189, %188 : vector<2x128xf32>
    %191 = math.exp %190 : vector<2x128xf32>
    %cst_39 = arith.constant 1.000000e+00 : f32
    %192 = vector.broadcast %cst_39 : f32 to vector<2x128xf32>
    %193 = arith.addf %192, %191 : vector<2x128xf32>
    %194 = tpu.reciprocal %193 {approx = true} : vector<2x128xf32> -> vector<2x128xf32>
    %195 = math.tanh %188 : vector<2x128xf32>
    %196 = vector.extract_strided_slice %194 {offsets = [0, 0], sizes = [2, 32], strides = [1, 1]} : vector<2x128xf32> to vector<2x32xf32>
    %197 = vector.extract_strided_slice %194 {offsets = [0, 32], sizes = [2, 32], strides = [1, 1]} : vector<2x128xf32> to vector<2x32xf32>
    %198 = vector.extract_strided_slice %195 {offsets = [0, 64], sizes = [2, 32], strides = [1, 1]} : vector<2x128xf32> to vector<2x32xf32>
    %199 = vector.extract_strided_slice %194 {offsets = [0, 96], sizes = [2, 32], strides = [1, 1]} : vector<2x128xf32> to vector<2x32xf32>
    %200 = arith.mulf %197, %161 : vector<2x32xf32>
    %201 = arith.mulf %196, %198 : vector<2x32xf32>
    %202 = arith.addf %200, %201 : vector<2x32xf32>
    %203 = math.tanh %202 : vector<2x32xf32>
    %204 = arith.mulf %199, %203 : vector<2x32xf32>
    %205 = vector.extract_strided_slice %5 {offsets = [10, 0], sizes = [2, 128], strides = [1, 1]} : vector<16x128xf32> to vector<2x128xf32>
    %206 = arith.truncf %183 : vector<2x32xf32> to vector<2x32xbf16>
    %cst_40 = arith.constant dense<0.000000e+00> : vector<2x128xf32>
    %207 = tpu.matmul %206, %6, %cst_40 {dimension_numbers = #tpu.dot_dimension_numbers<[1], [0], [0], [1], [0, 0, 1, 1], [], []>} : vector<2x32xbf16>, vector<32x128xbf16>, vector<2x128xf32> -> vector<2x128xf32>
    %208 = arith.addf %205, %207 : vector<2x128xf32>
    %cst_41 = arith.constant 0.000000e+00 : f32
    %209 = vector.broadcast %cst_41 : f32 to vector<2x128xf32>
    %210 = arith.subf %209, %208 : vector<2x128xf32>
    %211 = math.exp %210 : vector<2x128xf32>
    %cst_42 = arith.constant 1.000000e+00 : f32
    %212 = vector.broadcast %cst_42 : f32 to vector<2x128xf32>
    %213 = arith.addf %212, %211 : vector<2x128xf32>
    %214 = tpu.reciprocal %213 {approx = true} : vector<2x128xf32> -> vector<2x128xf32>
    %215 = math.tanh %208 : vector<2x128xf32>
    %216 = vector.extract_strided_slice %214 {offsets = [0, 0], sizes = [2, 32], strides = [1, 1]} : vector<2x128xf32> to vector<2x32xf32>
    %217 = vector.extract_strided_slice %214 {offsets = [0, 32], sizes = [2, 32], strides = [1, 1]} : vector<2x128xf32> to vector<2x32xf32>
    %218 = vector.extract_strided_slice %215 {offsets = [0, 64], sizes = [2, 32], strides = [1, 1]} : vector<2x128xf32> to vector<2x32xf32>
    %219 = vector.extract_strided_slice %214 {offsets = [0, 96], sizes = [2, 32], strides = [1, 1]} : vector<2x128xf32> to vector<2x32xf32>
    %220 = arith.mulf %217, %181 : vector<2x32xf32>
    %221 = arith.mulf %216, %218 : vector<2x32xf32>
    %222 = arith.addf %220, %221 : vector<2x32xf32>
    %223 = math.tanh %222 : vector<2x32xf32>
    %224 = arith.mulf %219, %223 : vector<2x32xf32>
    %225 = tpu.concatenate %224, %204 in 1 : vector<2x32xf32>, vector<2x32xf32> -> vector<2x64xf32>
    %226 = arith.truncf %225 : vector<2x64xf32> to vector<2x64xbf16>
    %cst_43 = arith.constant dense<0.000000e+00> : vector<2x128xf32>
    %227 = tpu.matmul %226, %7, %cst_43 {dimension_numbers = #tpu.dot_dimension_numbers<[1], [0], [0], [1], [0, 0, 1, 1], [], []>} : vector<2x64xbf16>, vector<64x128xbf16>, vector<2x128xf32> -> vector<2x128xf32>
    %228 = vector.broadcast %8 : vector<1x128xf32> to vector<2x128xf32>
    %229 = arith.addf %227, %228 : vector<2x128xf32>
    %cst_44 = arith.constant 0.000000e+00 : f32
    %230 = vector.broadcast %cst_44 : f32 to vector<2x128xf32>
    %231 = arith.subf %230, %229 : vector<2x128xf32>
    %232 = math.exp %231 : vector<2x128xf32>
    %cst_45 = arith.constant 1.000000e+00 : f32
    %233 = vector.broadcast %cst_45 : f32 to vector<2x128xf32>
    %234 = arith.addf %233, %232 : vector<2x128xf32>
    %235 = tpu.reciprocal %234 {approx = true} : vector<2x128xf32> -> vector<2x128xf32>
    %236 = math.tanh %229 : vector<2x128xf32>
    %237 = vector.extract_strided_slice %235 {offsets = [0, 0], sizes = [2, 32], strides = [1, 1]} : vector<2x128xf32> to vector<2x32xf32>
    %238 = vector.extract_strided_slice %235 {offsets = [0, 32], sizes = [2, 32], strides = [1, 1]} : vector<2x128xf32> to vector<2x32xf32>
    %239 = vector.extract_strided_slice %236 {offsets = [0, 64], sizes = [2, 32], strides = [1, 1]} : vector<2x128xf32> to vector<2x32xf32>
    %240 = vector.extract_strided_slice %235 {offsets = [0, 96], sizes = [2, 32], strides = [1, 1]} : vector<2x128xf32> to vector<2x32xf32>
    %241 = arith.mulf %238, %202 : vector<2x32xf32>
    %242 = arith.mulf %237, %239 : vector<2x32xf32>
    %243 = arith.addf %241, %242 : vector<2x32xf32>
    %244 = math.tanh %243 : vector<2x32xf32>
    %245 = arith.mulf %240, %244 : vector<2x32xf32>
    %246 = vector.extract_strided_slice %5 {offsets = [12, 0], sizes = [2, 128], strides = [1, 1]} : vector<16x128xf32> to vector<2x128xf32>
    %247 = arith.truncf %224 : vector<2x32xf32> to vector<2x32xbf16>
    %cst_46 = arith.constant dense<0.000000e+00> : vector<2x128xf32>
    %248 = tpu.matmul %247, %6, %cst_46 {dimension_numbers = #tpu.dot_dimension_numbers<[1], [0], [0], [1], [0, 0, 1, 1], [], []>} : vector<2x32xbf16>, vector<32x128xbf16>, vector<2x128xf32> -> vector<2x128xf32>
    %249 = arith.addf %246, %248 : vector<2x128xf32>
    %cst_47 = arith.constant 0.000000e+00 : f32
    %250 = vector.broadcast %cst_47 : f32 to vector<2x128xf32>
    %251 = arith.subf %250, %249 : vector<2x128xf32>
    %252 = math.exp %251 : vector<2x128xf32>
    %cst_48 = arith.constant 1.000000e+00 : f32
    %253 = vector.broadcast %cst_48 : f32 to vector<2x128xf32>
    %254 = arith.addf %253, %252 : vector<2x128xf32>
    %255 = tpu.reciprocal %254 {approx = true} : vector<2x128xf32> -> vector<2x128xf32>
    %256 = math.tanh %249 : vector<2x128xf32>
    %257 = vector.extract_strided_slice %255 {offsets = [0, 0], sizes = [2, 32], strides = [1, 1]} : vector<2x128xf32> to vector<2x32xf32>
    %258 = vector.extract_strided_slice %255 {offsets = [0, 32], sizes = [2, 32], strides = [1, 1]} : vector<2x128xf32> to vector<2x32xf32>
    %259 = vector.extract_strided_slice %256 {offsets = [0, 64], sizes = [2, 32], strides = [1, 1]} : vector<2x128xf32> to vector<2x32xf32>
    %260 = vector.extract_strided_slice %255 {offsets = [0, 96], sizes = [2, 32], strides = [1, 1]} : vector<2x128xf32> to vector<2x32xf32>
    %261 = arith.mulf %258, %222 : vector<2x32xf32>
    %262 = arith.mulf %257, %259 : vector<2x32xf32>
    %263 = arith.addf %261, %262 : vector<2x32xf32>
    %264 = math.tanh %263 : vector<2x32xf32>
    %265 = arith.mulf %260, %264 : vector<2x32xf32>
    %266 = tpu.concatenate %265, %245 in 1 : vector<2x32xf32>, vector<2x32xf32> -> vector<2x64xf32>
    %267 = arith.truncf %266 : vector<2x64xf32> to vector<2x64xbf16>
    %cst_49 = arith.constant dense<0.000000e+00> : vector<2x128xf32>
    %268 = tpu.matmul %267, %7, %cst_49 {dimension_numbers = #tpu.dot_dimension_numbers<[1], [0], [0], [1], [0, 0, 1, 1], [], []>} : vector<2x64xbf16>, vector<64x128xbf16>, vector<2x128xf32> -> vector<2x128xf32>
    %269 = vector.broadcast %8 : vector<1x128xf32> to vector<2x128xf32>
    %270 = arith.addf %268, %269 : vector<2x128xf32>
    %cst_50 = arith.constant 0.000000e+00 : f32
    %271 = vector.broadcast %cst_50 : f32 to vector<2x128xf32>
    %272 = arith.subf %271, %270 : vector<2x128xf32>
    %273 = math.exp %272 : vector<2x128xf32>
    %cst_51 = arith.constant 1.000000e+00 : f32
    %274 = vector.broadcast %cst_51 : f32 to vector<2x128xf32>
    %275 = arith.addf %274, %273 : vector<2x128xf32>
    %276 = tpu.reciprocal %275 {approx = true} : vector<2x128xf32> -> vector<2x128xf32>
    %277 = math.tanh %270 : vector<2x128xf32>
    %278 = vector.extract_strided_slice %276 {offsets = [0, 0], sizes = [2, 32], strides = [1, 1]} : vector<2x128xf32> to vector<2x32xf32>
    %279 = vector.extract_strided_slice %276 {offsets = [0, 32], sizes = [2, 32], strides = [1, 1]} : vector<2x128xf32> to vector<2x32xf32>
    %280 = vector.extract_strided_slice %277 {offsets = [0, 64], sizes = [2, 32], strides = [1, 1]} : vector<2x128xf32> to vector<2x32xf32>
    %281 = vector.extract_strided_slice %276 {offsets = [0, 96], sizes = [2, 32], strides = [1, 1]} : vector<2x128xf32> to vector<2x32xf32>
    %282 = arith.mulf %279, %243 : vector<2x32xf32>
    %283 = arith.mulf %278, %280 : vector<2x32xf32>
    %284 = arith.addf %282, %283 : vector<2x32xf32>
    %285 = math.tanh %284 : vector<2x32xf32>
    %286 = arith.mulf %281, %285 : vector<2x32xf32>
    %287 = vector.extract_strided_slice %5 {offsets = [14, 0], sizes = [2, 128], strides = [1, 1]} : vector<16x128xf32> to vector<2x128xf32>
    %288 = arith.truncf %265 : vector<2x32xf32> to vector<2x32xbf16>
    %cst_52 = arith.constant dense<0.000000e+00> : vector<2x128xf32>
    %289 = tpu.matmul %288, %6, %cst_52 {dimension_numbers = #tpu.dot_dimension_numbers<[1], [0], [0], [1], [0, 0, 1, 1], [], []>} : vector<2x32xbf16>, vector<32x128xbf16>, vector<2x128xf32> -> vector<2x128xf32>
    %290 = arith.addf %287, %289 : vector<2x128xf32>
    %cst_53 = arith.constant 0.000000e+00 : f32
    %291 = vector.broadcast %cst_53 : f32 to vector<2x128xf32>
    %292 = arith.subf %291, %290 : vector<2x128xf32>
    %293 = math.exp %292 : vector<2x128xf32>
    %cst_54 = arith.constant 1.000000e+00 : f32
    %294 = vector.broadcast %cst_54 : f32 to vector<2x128xf32>
    %295 = arith.addf %294, %293 : vector<2x128xf32>
    %296 = tpu.reciprocal %295 {approx = true} : vector<2x128xf32> -> vector<2x128xf32>
    %297 = math.tanh %290 : vector<2x128xf32>
    %298 = vector.extract_strided_slice %296 {offsets = [0, 0], sizes = [2, 32], strides = [1, 1]} : vector<2x128xf32> to vector<2x32xf32>
    %299 = vector.extract_strided_slice %296 {offsets = [0, 32], sizes = [2, 32], strides = [1, 1]} : vector<2x128xf32> to vector<2x32xf32>
    %300 = vector.extract_strided_slice %297 {offsets = [0, 64], sizes = [2, 32], strides = [1, 1]} : vector<2x128xf32> to vector<2x32xf32>
    %301 = vector.extract_strided_slice %296 {offsets = [0, 96], sizes = [2, 32], strides = [1, 1]} : vector<2x128xf32> to vector<2x32xf32>
    %302 = arith.mulf %299, %263 : vector<2x32xf32>
    %303 = arith.mulf %298, %300 : vector<2x32xf32>
    %304 = arith.addf %302, %303 : vector<2x32xf32>
    %305 = math.tanh %304 : vector<2x32xf32>
    %306 = arith.mulf %301, %305 : vector<2x32xf32>
    %307 = tpu.concatenate %306, %286 in 1 : vector<2x32xf32>, vector<2x32xf32> -> vector<2x64xf32>
    %308 = arith.truncf %307 : vector<2x64xf32> to vector<2x64xbf16>
    %cst_55 = arith.constant dense<0.000000e+00> : vector<2x128xf32>
    %309 = tpu.matmul %308, %7, %cst_55 {dimension_numbers = #tpu.dot_dimension_numbers<[1], [0], [0], [1], [0, 0, 1, 1], [], []>} : vector<2x64xbf16>, vector<64x128xbf16>, vector<2x128xf32> -> vector<2x128xf32>
    %310 = vector.broadcast %8 : vector<1x128xf32> to vector<2x128xf32>
    %311 = arith.addf %309, %310 : vector<2x128xf32>
    %cst_56 = arith.constant 0.000000e+00 : f32
    %312 = vector.broadcast %cst_56 : f32 to vector<2x128xf32>
    %313 = arith.subf %312, %311 : vector<2x128xf32>
    %314 = math.exp %313 : vector<2x128xf32>
    %cst_57 = arith.constant 1.000000e+00 : f32
    %315 = vector.broadcast %cst_57 : f32 to vector<2x128xf32>
    %316 = arith.addf %315, %314 : vector<2x128xf32>
    %317 = tpu.reciprocal %316 {approx = true} : vector<2x128xf32> -> vector<2x128xf32>
    %318 = math.tanh %311 : vector<2x128xf32>
    %319 = vector.extract_strided_slice %317 {offsets = [0, 0], sizes = [2, 32], strides = [1, 1]} : vector<2x128xf32> to vector<2x32xf32>
    %320 = vector.extract_strided_slice %317 {offsets = [0, 32], sizes = [2, 32], strides = [1, 1]} : vector<2x128xf32> to vector<2x32xf32>
    %321 = vector.extract_strided_slice %318 {offsets = [0, 64], sizes = [2, 32], strides = [1, 1]} : vector<2x128xf32> to vector<2x32xf32>
    %322 = vector.extract_strided_slice %317 {offsets = [0, 96], sizes = [2, 32], strides = [1, 1]} : vector<2x128xf32> to vector<2x32xf32>
    %323 = arith.mulf %320, %284 : vector<2x32xf32>
    %324 = arith.mulf %319, %321 : vector<2x32xf32>
    %325 = arith.addf %323, %324 : vector<2x32xf32>
    %326 = math.tanh %325 : vector<2x32xf32>
    %327 = arith.mulf %322, %326 : vector<2x32xf32>
    %c0_58 = arith.constant 0 : index
    %c0_59 = arith.constant 0 : index
    %328 = vector.load %arg1[%c0_58, %c0_59] : memref<2x64xbf16, #tpu.memory_space<vmem>>, vector<2x64xbf16>
    %c0_60 = arith.constant 0 : index
    %c0_61 = arith.constant 0 : index
    %329 = vector.load %arg8[%c0_60, %c0_61] : memref<64x32xbf16, #tpu.memory_space<vmem>>, vector<64x32xbf16>
    %cst_62 = arith.constant dense<0.000000e+00> : vector<2x32xf32>
    %330 = tpu.matmul %328, %329, %cst_62 {dimension_numbers = #tpu.dot_dimension_numbers<[1], [0], [0], [1], [0, 0, 1, 1], [], []>} : vector<2x64xbf16>, vector<64x32xbf16>, vector<2x32xf32> -> vector<2x32xf32>
    %c0_63 = arith.constant 0 : index
    %c0_64 = arith.constant 0 : index
    %331 = vector.load %arg9[%c0_63, %c0_64] : memref<1x32xf32, #tpu.memory_space<vmem>>, vector<1x32xf32>
    %332 = vector.broadcast %331 : vector<1x32xf32> to vector<2x32xf32>
    %333 = arith.addf %330, %332 : vector<2x32xf32>
    %cst_65 = arith.constant 0.000000e+00 : f32
    %334 = vector.broadcast %cst_65 : f32 to vector<2x32xf32>
    %335 = arith.maximumf %333, %334 : vector<2x32xf32>
    %336 = tpu.concatenate %327, %335 in 1 : vector<2x32xf32>, vector<2x32xf32> -> vector<2x64xf32>
    %337 = arith.truncf %336 : vector<2x64xf32> to vector<2x64xbf16>
    %c0_66 = arith.constant 0 : index
    %c0_67 = arith.constant 0 : index
    %338 = vector.load %arg10[%c0_66, %c0_67] : memref<64x32xbf16, #tpu.memory_space<vmem>>, vector<64x32xbf16>
    %cst_68 = arith.constant dense<0.000000e+00> : vector<2x32xf32>
    %339 = tpu.matmul %337, %338, %cst_68 {dimension_numbers = #tpu.dot_dimension_numbers<[1], [0], [0], [1], [0, 0, 1, 1], [], []>} : vector<2x64xbf16>, vector<64x32xbf16>, vector<2x32xf32> -> vector<2x32xf32>
    %c0_69 = arith.constant 0 : index
    %c0_70 = arith.constant 0 : index
    %340 = vector.load %arg11[%c0_69, %c0_70] : memref<1x32xf32, #tpu.memory_space<vmem>>, vector<1x32xf32>
    %341 = vector.broadcast %340 : vector<1x32xf32> to vector<2x32xf32>
    %342 = arith.addf %339, %341 : vector<2x32xf32>
    %c0_71 = arith.constant 0 : index
    %c0_72 = arith.constant 0 : index
    %343 = vector.load %arg21[%c0_71, %c0_72] : memref<2x32xf32, #tpu.memory_space<vmem>>, vector<2x32xf32>
    tpu.vector_store %arg21[%c0_71, %c0_72], %342 {strides = array<i32>} : memref<2x32xf32, #tpu.memory_space<vmem>>, vector<2x32xf32>,
    %344 = vector.extract_strided_slice %342 {offsets = [0, 0], sizes = [2, 16], strides = [1, 1]} : vector<2x32xf32> to vector<2x16xf32>
    %345 = vector.extract_strided_slice %342 {offsets = [0, 16], sizes = [2, 16], strides = [1, 1]} : vector<2x32xf32> to vector<2x16xf32>
    %c0_73 = arith.constant 0 : index
    %c0_74 = arith.constant 0 : index
    %346 = vector.load %arg2[%c0_73, %c0_74] : memref<2x16xf32, #tpu.memory_space<vmem>>, vector<2x16xf32>
    %cst_75 = arith.constant 5.000000e-01 : f32
    %347 = vector.broadcast %cst_75 : f32 to vector<2x16xf32>
    %348 = arith.mulf %347, %345 : vector<2x16xf32>
    %349 = math.exp %348 : vector<2x16xf32>
    %350 = arith.mulf %346, %349 : vector<2x16xf32>
    %351 = arith.addf %344, %350 : vector<2x16xf32>
    %352 = arith.truncf %351 : vector<2x16xf32> to vector<2x16xbf16>
    %353 = tpu.concatenate %352, %328 in 1 : vector<2x16xbf16>, vector<2x64xbf16> -> vector<2x80xbf16>
    %c0_76 = arith.constant 0 : index
    %c0_77 = arith.constant 0 : index
    %354 = vector.load %arg12[%c0_76, %c0_77] : memref<80x32xbf16, #tpu.memory_space<vmem>>, vector<80x32xbf16>
    %cst_78 = arith.constant dense<0.000000e+00> : vector<2x32xf32>
    %355 = tpu.matmul %353, %354, %cst_78 {dimension_numbers = #tpu.dot_dimension_numbers<[1], [0], [0], [1], [0, 0, 1, 1], [], []>} : vector<2x80xbf16>, vector<80x32xbf16>, vector<2x32xf32> -> vector<2x32xf32>
    %c0_79 = arith.constant 0 : index
    %c0_80 = arith.constant 0 : index
    %356 = vector.load %arg13[%c0_79, %c0_80] : memref<1x32xf32, #tpu.memory_space<vmem>>, vector<1x32xf32>
    %357 = vector.broadcast %356 : vector<1x32xf32> to vector<2x32xf32>
    %358 = arith.addf %355, %357 : vector<2x32xf32>
    %359 = arith.truncf %358 : vector<2x32xf32> to vector<2x32xbf16>
    %c0_81 = arith.constant 0 : index
    %c0_82 = arith.constant 0 : index
    %360 = vector.load %arg14[%c0_81, %c0_82] : memref<32x128xbf16, #tpu.memory_space<vmem>>, vector<32x128xbf16>
    %cst_83 = arith.constant dense<0.000000e+00> : vector<2x128xf32>
    %361 = tpu.matmul %359, %360, %cst_83 {dimension_numbers = #tpu.dot_dimension_numbers<[1], [0], [0], [1], [0, 0, 1, 1], [], []>} : vector<2x32xbf16>, vector<32x128xbf16>, vector<2x128xf32> -> vector<2x128xf32>
    %c0_84 = arith.constant 0 : index
    %c0_85 = arith.constant 0 : index
    %362 = vector.load %arg15[%c0_84, %c0_85] : memref<1x128xf32, #tpu.memory_space<vmem>>, vector<1x128xf32>
    %363 = vector.broadcast %362 : vector<1x128xf32> to vector<2x128xf32>
    %364 = arith.addf %361, %363 : vector<2x128xf32>
    %cst_86 = arith.constant 0.000000e+00 : f32
    %365 = vector.broadcast %cst_86 : f32 to vector<2x128xf32>
    %366 = arith.subf %365, %364 : vector<2x128xf32>
    %367 = math.exp %366 : vector<2x128xf32>
    %cst_87 = arith.constant 1.000000e+00 : f32
    %368 = vector.broadcast %cst_87 : f32 to vector<2x128xf32>
    %369 = arith.addf %368, %367 : vector<2x128xf32>
    %370 = tpu.reciprocal %369 {approx = true} : vector<2x128xf32> -> vector<2x128xf32>
    %371 = math.tanh %364 : vector<2x128xf32>
    %372 = vector.extract_strided_slice %370 {offsets = [0, 0], sizes = [2, 32], strides = [1, 1]} : vector<2x128xf32> to vector<2x32xf32>
    %373 = vector.extract_strided_slice %371 {offsets = [0, 64], sizes = [2, 32], strides = [1, 1]} : vector<2x128xf32> to vector<2x32xf32>
    %374 = vector.extract_strided_slice %370 {offsets = [0, 96], sizes = [2, 32], strides = [1, 1]} : vector<2x128xf32> to vector<2x32xf32>
    %375 = arith.mulf %372, %373 : vector<2x32xf32>
    %376 = math.tanh %375 : vector<2x32xf32>
    %377 = arith.mulf %374, %376 : vector<2x32xf32>
    %378 = arith.truncf %377 : vector<2x32xf32> to vector<2x32xbf16>
    %c0_88 = arith.constant 0 : index
    %c0_89 = arith.constant 0 : index
    %379 = vector.load %arg16[%c0_88, %c0_89] : memref<32x128xbf16, #tpu.memory_space<vmem>>, vector<32x128xbf16>
    %cst_90 = arith.constant dense<0.000000e+00> : vector<2x128xf32>
    %380 = tpu.matmul %378, %379, %cst_90 {dimension_numbers = #tpu.dot_dimension_numbers<[1], [0], [0], [1], [0, 0, 1, 1], [], []>} : vector<2x32xbf16>, vector<32x128xbf16>, vector<2x128xf32> -> vector<2x128xf32>
    %c0_91 = arith.constant 0 : index
    %c0_92 = arith.constant 0 : index
    %381 = vector.load %arg17[%c0_91, %c0_92] : memref<1x128xf32, #tpu.memory_space<vmem>>, vector<1x128xf32>
    %382 = vector.broadcast %381 : vector<1x128xf32> to vector<2x128xf32>
    %383 = arith.addf %380, %382 : vector<2x128xf32>
    %cst_93 = arith.constant 0.000000e+00 : f32
    %384 = vector.broadcast %cst_93 : f32 to vector<2x128xf32>
    %385 = arith.subf %384, %383 : vector<2x128xf32>
    %386 = math.exp %385 : vector<2x128xf32>
    %cst_94 = arith.constant 1.000000e+00 : f32
    %387 = vector.broadcast %cst_94 : f32 to vector<2x128xf32>
    %388 = arith.addf %387, %386 : vector<2x128xf32>
    %389 = tpu.reciprocal %388 {approx = true} : vector<2x128xf32> -> vector<2x128xf32>
    %390 = math.tanh %383 : vector<2x128xf32>
    %391 = vector.extract_strided_slice %389 {offsets = [0, 0], sizes = [2, 32], strides = [1, 1]} : vector<2x128xf32> to vector<2x32xf32>
    %392 = vector.extract_strided_slice %390 {offsets = [0, 64], sizes = [2, 32], strides = [1, 1]} : vector<2x128xf32> to vector<2x32xf32>
    %393 = vector.extract_strided_slice %389 {offsets = [0, 96], sizes = [2, 32], strides = [1, 1]} : vector<2x128xf32> to vector<2x32xf32>
    %394 = arith.mulf %391, %392 : vector<2x32xf32>
    %395 = math.tanh %394 : vector<2x32xf32>
    %396 = arith.mulf %393, %395 : vector<2x32xf32>
    %397 = arith.truncf %396 : vector<2x32xf32> to vector<2x32xbf16>
    %c0_95 = arith.constant 0 : index
    %c0_96 = arith.constant 0 : index
    %398 = vector.load %arg18[%c0_95, %c0_96] : memref<32x64xbf16, #tpu.memory_space<vmem>>, vector<32x64xbf16>
    %cst_97 = arith.constant dense<0.000000e+00> : vector<2x64xf32>
    %399 = tpu.matmul %397, %398, %cst_97 {dimension_numbers = #tpu.dot_dimension_numbers<[1], [0], [0], [1], [0, 0, 1, 1], [], []>} : vector<2x32xbf16>, vector<32x64xbf16>, vector<2x64xf32> -> vector<2x64xf32>
    %c0_98 = arith.constant 0 : index
    %c0_99 = arith.constant 0 : index
    %400 = vector.load %arg19[%c0_98, %c0_99] : memref<1x64xf32, #tpu.memory_space<vmem>>, vector<1x64xf32>
    %401 = vector.broadcast %400 : vector<1x64xf32> to vector<2x64xf32>
    %402 = arith.addf %399, %401 : vector<2x64xf32>
    %cst_100 = arith.constant 0.000000e+00 : f32
    %403 = vector.broadcast %cst_100 : f32 to vector<2x64xf32>
    %404 = arith.subf %403, %402 : vector<2x64xf32>
    %405 = math.exp %404 : vector<2x64xf32>
    %cst_101 = arith.constant 1.000000e+00 : f32
    %406 = vector.broadcast %cst_101 : f32 to vector<2x64xf32>
    %407 = arith.addf %406, %405 : vector<2x64xf32>
    %408 = tpu.reciprocal %407 {approx = true} : vector<2x64xf32> -> vector<2x64xf32>
    %c0_102 = arith.constant 0 : index
    %c0_103 = arith.constant 0 : index
    %409 = vector.load %arg20[%c0_102, %c0_103] : memref<2x64xf32, #tpu.memory_space<vmem>>, vector<2x64xf32>
    tpu.vector_store %arg20[%c0_102, %c0_103], %408 {strides = array<i32>} : memref<2x64xf32, #tpu.memory_space<vmem>>, vector<2x64xf32>,
    return
  }
}

</mosaic_0001>

<bundles_post_ra>
// kernel: tpu_custom_call.1
= control target key start
LH: loop header
LB: loop body
LE: loop exit
PB: predicated region body
PF: predicated region fallthrough
CT: control target
= control target key end

     0   :  { %s3144_s0 = inlined_call_operand.vmem [shape: bf16[16,16], index: 0, kind: input, shape index: {}]   ;;  %s3145_s1 = inlined_call_operand.vmem [shape: bf16[2,64], index: 1, kind: input, shape index: {}]   ;;  %s3146_s2 = inlined_call_operand.vmem [shape: f32[2,16], index: 2, kind: input, shape index: {}]   ;;  %s3147_s3 = inlined_call_operand.vmem [shape: bf16[16,128], index: 3, kind: input, shape index: {}]   ;;  %s3148_s4 = inlined_call_operand.vmem [shape: bf16[32,128], index: 4, kind: input, shape index: {}]   ;;  %s3149_s5 = inlined_call_operand.vmem [shape: f32[1,128], index: 5, kind: input, shape index: {}]   ;;  %s3150_s6 = inlined_call_operand.vmem [shape: bf16[64,128], index: 6, kind: input, shape index: {}]   ;;  %s3151_s7 = inlined_call_operand.vmem [shape: f32[1,128], index: 7, kind: input, shape index: {}]   ;;  %s3152_s8 = inlined_call_operand.vmem [shape: bf16[64,32], index: 8, kind: input, shape index: {}]   ;;  %s3153_s9 = inlined_call_operand.vmem [shape: f32[1,32], index: 9, kind: input, shape index: {}]   ;;  %s3154_s10 = inlined_call_operand.vmem [shape: bf16[64,32], index: 10, kind: input, shape index: {}]   ;;  %s3155_s11 = inlined_call_operand.vmem [shape: f32[1,32], index: 11, kind: input, shape index: {}]   ;;  %s3156_s12 = inlined_call_operand.vmem [shape: bf16[80,32], index: 12, kind: input, shape index: {}]   ;;  %s3157_s13 = inlined_call_operand.vmem [shape: f32[1,32], index: 13, kind: input, shape index: {}]   ;;  %s3158_s14 = inlined_call_operand.vmem [shape: bf16[32,128], index: 14, kind: input, shape index: {}]   ;;  %s3159_s15 = inlined_call_operand.vmem [shape: f32[1,128], index: 15, kind: input, shape index: {}]   ;;  %s3160_s16 = inlined_call_operand.vmem [shape: bf16[32,128], index: 16, kind: input, shape index: {}]   ;;  %s3161_s17 = inlined_call_operand.vmem [shape: f32[1,128], index: 17, kind: input, shape index: {}]   ;;  %s3162_s18 = inlined_call_operand.vmem [shape: bf16[32,64], index: 18, kind: input, shape index: {}]   ;;  %s3163_s19 = inlined_call_operand.vmem [shape: f32[1,64], index: 19, kind: input, shape index: {}]   ;;  %s3164_s20 = inlined_call_operand.hbm [shape: f32[2,64], index: 20, kind: output, shape index: {0}]   ;;  %s3165_s21 = inlined_call_operand.hbm [shape: f32[2,32], index: 21, kind: output, shape index: {1}]  }
   0x1   :  { %3167 = sst [smem:[#allocation8_spill]] %s3144_s0 }
   0x2   :  { %3168 = sst [smem:[#allocation9_spill]] %s3145_s1 }
   0x3   :  { %3169 = sst [smem:[#allocation10_spill]] %s3146_s2 }
   0x4   :  { %3170 = sst [smem:[#allocation11_spill]] %s3147_s3 }
   0x5   :  { %3171 = sst [smem:[#allocation12_spill]] %s3148_s4 }
   0x6   :  { %3172 = sst [smem:[#allocation13_spill]] %s3149_s5 }
   0x7   :  { %27 = vsyncpa [#allocation3], 0  ;;  %s3173_s26 = sld [smem:[#allocation11_spill]]  ;;  %v2542_v1 = vmov 0.0   ;;  %s3174_s28 = sld [smem:[#allocation8_spill]]  ;;  %vm2543_vm0 = vmmov 0  }
   0x8   :  { %2083 = vmatprep.subr.bf16.mxu0 %v2542_v1  ;;  %2089 = vmatprep.subr.bf16.mxu1 %v2542_v1  ;;  %vm92_vm1 = vcmask 130048  }
   0x9   :  { %2085 = vmatprep.mubr.msk.bf16.mxu0 %vm2543_vm0, %v2542_v1  ;;  %2093 = vmatprep.mubr.msk.bf16.mxu1 %vm2543_vm0, %v2542_v1 }
   0xd   :  { %v2314_v0 = vld [vmem:[%s3173_s26] sm:$0xff]  }
   0xe   :  { %v2315_v2 = vld [vmem:[%s3174_s28] sm:$0xff]   ;;  %2084 = vmatpush3.bf16.msra.mxu0 %v2314_v0 }
   0xf   :  { %2097 = vmatprep.subr.bf16.mxu0 %v2542_v1 }
  0x11   :  { %2086 = vmatmul.mubr.msk.bf16.vlgmr.msra.gmra.mrb[0].mxu0 %vm92_vm1, %v2315_v2 }
  0x12   :  { %2101 = vmatprep.mubr.msk.bf16.mxu0 %vm2543_vm0, %v2542_v1 }
  0x13   :  { %28 = vsyncpa [#allocation5], 0  ;;  %s3175_s4 = sld [smem:[#allocation13_spill]]  ;;  %s2544_s30 = smov 64   ;;  %v2696_v19 = vld [vmem:[%s3150_s6] sm:$0xff]   ;;  %v2708_v21 = vld [vmem:[%s3150_s6 + $0x8] sm:$0xff]  }
  0x14   :  { %s3176_s23 = sld [smem:[#allocation12_spill]]  ;;  %2090 = vmatpush3.bf16.msra.mxu1 %v2696_v19  ;;  %s2545_s3 = smov 96   ;;  %vm189_vm2 = vcmask 261120   ;;  %v2735_v27 = vld [vmem:[%s3151_s7] ss:$0 sm:$0xff]  ;;  %v2753_v61 = vld [vmem:[%s3150_s6 + $0x10] sm:$0xff]  }
  0x15   :  { %2091 = vmatprep.subr.bf16.mxu1 %v2542_v1  ;;  %s2546_s28 = smov 32   ;;  %vm359_vm3 = vcmask 523264   ;;  %s3177_s2 = sld [smem:[#allocation9_spill]]  ;;  %vm1541_vm4 = vcmask 254976   ;;  %vm1621_vm5 = vcmask 654336  }
  0x16   :  { %s2548_s1 = smov 16  }
  0x18   :  { %2092 = vmatpush3.bf16.msra.mxu1 %v2708_v21 }
  0x19   :  { %v1940_v3 = vld [vmem:[%s3175_s4] ss:$0 sm:$0xff]  ;;  %2105 = vmatprep.subr.bf16.mxu1 %v2542_v1  ;;  %s2549_s4 = smov 112  }
  0x1a   :  { %v2691_v18 = vld [vmem:[%s3176_s23] sm:$0xff]   ;;  %v2703_v20 = vld [vmem:[%s3176_s23 + $0x8] sm:$0xff]  }
  0x1b   :  { %2098 = vmatpush3.bf16.msra.mxu0 %v2691_v18 }
  0x1c   :  { %2099 = vmatprep.subr.bf16.mxu0 %v2542_v1 }
  0x1f   :  { %2100 = vmatpush3.bf16.msra.mxu0 %v2703_v20 }
  0x20   :  { %2117 = vmatprep.subr.bf16.mxu0 %v2542_v1 }
  0xe4   :  { %v130_v4 = vpop.f32.mrb[0].mxu0 }
  0xe5   :  { %v2681_v5 = vadd.f32 %v1940_v3, %v130_v4  ;;  %v2087_v6 = vpop.f32.mrb[1].mxu0 }
  0xe6   :  { %v133_v7 = vpop.f32.mrb[2].mxu0 }
  0xe7   :  { %v2683_v8 = vadd.f32 %v1940_v3, %v133_v7  ;;  %v2088_v9 = vpop.f32.mrb[3].mxu0  ;;  %2341 = vtanh.f32 %v2681_v5  ;;  %v150_v11 = vsub.f32 0.0, %v2681_v5  ;;  %v2762_v3 = vld [vmem:[%s3150_s6 + $0x18] sm:$0xff]  }
  0xe9   :  { %v151_v12 = vmul.f32 1.442695, %v150_v11 }
  0xeb   :  { %2343 = vpow2.f32 %v151_v12 }
  0xf1   :  { %v2342_v10 = vpop.eup %2341 }
  0xf2   :  { %157 = vrot.lane.b32.xlu0 %v2342_v10, %s2544_s30 }
  0xf5   :  { %v2344_v13 = vpop.eup %2343 }
  0xf6   :  { %v153_v14 = vadd.f32 1.0, %v2344_v13 }
  0xf8   :  { %2345 = vrcp.f32 %v153_v14 }
 0x102   :  { %v2346_v15 = vpop.eup %2345 }
 0x164   :  { %v158_v16 = vpop.permute.xlu0 %157 }
 0x165   :  { %v160_v17 = vmul.f32 %v2346_v15, %v158_v16 }
 0x167   :  { %2347 = vtanh.f32 %v160_v17  ;;  %v313_v41 = vrot.slane %v160_v17, 6 }
 0x171   :  { %v2348_v22 = vpop.eup %2347 }
 0x172   :  { %163 = vrot.lane.b32.xlu0 %v2348_v22, %s2545_s3 }
 0x1e4   :  { %v164_v23 = vpop.permute.xlu0 %163 }
 0x1e5   :  { %v166_v24 = vmul.f32 %v2346_v15, %v164_v23 }
 0x1e7   :  { %v167_v25 = vpack.c.bf16 %v166_v24, %v166_v24 }
 0x1e9   :  { %175 = vrot.lane.b32.xlu1 %v167_v25, %s2546_s28 }
 0x25b   :  { %v176_v26 = vpop.permute.xlu1 %175 }
 0x25c   :  { %2094 = vmatmul.mubr.msk.bf16.vlgmr.msra.gmra.mrb[0].mxu1 %vm189_vm2, %v176_v26  ;;  %2102 = vmatmul.mubr.msk.bf16.vlgmr.msra.gmra.mrb[4].mxu0 %vm189_vm2, %v176_v26 }
 0x25d   :  { %2106 = vmatpush3.bf16.msra.mxu1 %v2696_v19  ;;  %2118 = vmatpush3.bf16.msra.mxu0 %v2691_v18 }
 0x25e   :  { %2107 = vmatprep.subr.bf16.mxu1 %v2542_v1  ;;  %2119 = vmatprep.subr.bf16.mxu0 %v2542_v1 }
 0x25f   :  { %2121 = vmatprep.mubr.msk.bf16.mxu0 %vm2543_vm0, %v2542_v1  ;;  %2113 = vmatprep.mubr.msk.bf16.mxu1 %vm2543_vm0, %v2542_v1 }
 0x261   :  { %2108 = vmatpush3.bf16.msra.mxu1 %v2708_v21  ;;  %2120 = vmatpush3.bf16.msra.mxu0 %v2703_v20 }
 0x262   :  { %2109 = vmatprep.subr.bf16.mxu1 %v2542_v1  ;;  %2125 = vmatprep.subr.bf16.mxu0 %v2542_v1 }
 0x265   :  { %2110 = vmatpush3.bf16.msra.mxu1 %v2753_v61 }
 0x266   :  { %2111 = vmatprep.subr.bf16.mxu1 %v2542_v1 }
 0x269   :  { %2112 = vmatpush3.bf16.msra.mxu1 %v2762_v3 }
 0x26a   :  { %2137 = vmatprep.subr.bf16.mxu1 %v2542_v1 }
 0x32f   :  { %v227_v28 = vpop.f32.mrb[0].mxu1  ;;  %v296_v29 = vpop.f32.mrb[4].mxu0 }
 0x330   :  { %v228_v30 = vadd.f32 %v2735_v27, %v227_v28  ;;  %v303_v31 = vrot.slane %v296_v29, 6  ;;  %v2095_v32 = vpop.f32.mrb[1].mxu1  ;;  %v2103_v33 = vpop.f32.mrb[5].mxu0 }
 0x331   :  { %v230_v34 = vpop.f32.mrb[2].mxu1  ;;  %v299_v35 = vpop.f32.mrb[6].mxu0 }
 0x332   :  { %2349 = vtanh.f32 %v228_v30  ;;  %v305_v36 = vadd.f32 %v303_v31, %v2681_v5  ;;  %v2096_v37 = vpop.f32.mrb[3].mxu1  ;;  %v2104_v38 = vpop.f32.mrb[7].mxu0  ;;  %v233_v42 = vsub.f32 0.0, %v228_v30 }
 0x334   :  { %2351 = vtanh.f32 %v305_v36  ;;  %v306_v43 = vsub.f32 0.0, %v305_v36  ;;  %v234_v44 = vmul.f32 1.442695, %v233_v42 }
 0x336   :  { %v307_v45 = vmul.f32 1.442695, %v306_v43  ;;  %2353 = vpow2.f32 %v234_v44 }
 0x338   :  { %2355 = vpow2.f32 %v307_v45 }
 0x33c   :  { %v2350_v39 = vpop.eup %2349 }
 0x33d   :  { %240 = vrot.lane.b32.xlu0 %v2350_v39, %s2544_s30 }
 0x33e   :  { %v2352_v40 = vpop.eup %2351 }
 0x33f   :  { %319 = vrot.lane.b32.xlu1 %v2352_v40, %s2544_s30 }
 0x340   :  { %v2354_v46 = vpop.eup %2353 }
 0x341   :  { %v236_v48 = vadd.f32 1.0, %v2354_v46 }
 0x342   :  { %v2356_v47 = vpop.eup %2355 }
 0x343   :  { %314 = vrot.lane.b32.xlu1 %v313_v41, %s2546_s28  ;;  %v309_v49 = vadd.f32 1.0, %v2356_v47  ;;  %2357 = vrcp.f32 %v236_v48 }
 0x345   :  { %2359 = vrcp.f32 %v309_v49 }
 0x34d   :  { %v2358_v50 = vpop.eup %2357 }
 0x34f   :  { %v2360_v53 = vpop.eup %2359 }
 0x3af   :  { %v241_v51 = vpop.permute.xlu0 %240 }
 0x3b0   :  { %v2742_v52 = vmul.f32 %v2358_v50, %v241_v51 }
 0x3b1   :  { %v320_v54 = vpop.permute.xlu1 %319 }
 0x3b2   :  { %2361 = vtanh.f32 %v2742_v52  ;;  %v322_v55 = vmul.f32 %v2360_v53, %v320_v54 }
 0x3b4   :  { %324 = vrot.lane.b32.xlu0 %v322_v55, %s2546_s28 }
 0x3b5   :  { %v315_v57 = vpop.permute.xlu1 %314 }
 0x3b6   :  { %v317_v58 = vmul.f32 %v2360_v53, %v315_v57 }
 0x3bc   :  { %v2362_v56 = vpop.eup %2361 }
 0x3bd   :  { %246 = vrot.lane.b32.xlu1 %v2362_v56, %s2545_s3 }
 0x426   :  { %v325_v59 = vpop.permute.xlu0 %324 }
 0x427   :  { %v2747_v60 = vadd.f32 %v325_v59, %v317_v58 }
 0x429   :  { %2363 = vtanh.f32 %v2747_v60  ;;  %v489_v49 = vrot.slane %v2747_v60, 6 }
 0x42f   :  { %v247_v62 = vpop.permute.xlu1 %246 }
 0x430   :  { %v249_v63 = vmul.f32 %v2358_v50, %v247_v62 }
 0x432   :  { %v339_v2 = vrot.slane %v249_v63, 6 }
 0x433   :  { %v2364_v0 = vpop.eup %2363 }
 0x434   :  { %330 = vrot.lane.b32.xlu0 %v2364_v0, %s2544_s30 }
 0x438   :  { %340 = vrot.lane.b32.xlu0 %v339_v2, %s2544_s30 }
 0x4a6   :  { %v331_v4 = vpop.permute.xlu0 %330 }
 0x4a7   :  { %v333_v6 = vmul.f32 %v2360_v53, %v331_v4 }
 0x4a9   :  { %v430_v7 = vpack.c.bf16 %v333_v6, %v333_v6  ;;  %335 = vrot.lane.b32.xlu1 %v333_v6, %s2546_s28 }
 0x4aa   :  { %v341_v10 = vpop.permute.xlu0 %340 }
 0x4ab   :  { %v432_v9 = vrot.slane %v430_v7, 1 }
 0x4ad   :  { %433 = vrot.lane.b32.xlu1 %v432_v9, %s2546_s28 }
 0x51b   :  { %v336_v11 = vpop.permute.xlu1 %335 }
 0x51c   :  { %v343_v12 = vsel %vm189_vm2, %v336_v11, %v341_v10 }
 0x51d   :  { %v344_v13 = vpack.c.bf16 %v343_v12, %v343_v12 }
 0x51f   :  { %v346_v14 = vrot.slane %v344_v13, 1  ;;  %v434_v15 = vpop.permute.xlu1 %433 }
 0x520   :  { %2122 = vmatmul.mubr.msk.bf16.vlgmr.msra.gmra.mrb[8].mxu0 %vm189_vm2, %v434_v15 }
 0x521   :  { %2114 = vmatmul.mubr.msk.bf16.vlgmr.msra.gmra.mrb[4].mxu1 %vm359_vm3, %v346_v14  ;;  %2126 = vmatpush3.bf16.msra.mxu0 %v2696_v19 }
 0x522   :  { %2127 = vmatprep.subr.bf16.mxu0 %v2542_v1  ;;  %2138 = vmatpush3.bf16.msra.mxu1 %v2691_v18 }
 0x523   :  { %2139 = vmatprep.subr.bf16.mxu1 %v2542_v1  ;;  %2141 = vmatprep.mubr.msk.bf16.mxu1 %vm2543_vm0, %v2542_v1 }
 0x524   :  { %2133 = vmatprep.mubr.msk.bf16.mxu0 %vm2543_vm0, %v2542_v1 }
 0x525   :  { %2128 = vmatpush3.bf16.msra.mxu0 %v2708_v21 }
 0x526   :  { %2129 = vmatprep.subr.bf16.mxu0 %v2542_v1  ;;  %2140 = vmatpush3.bf16.msra.mxu1 %v2703_v20 }
 0x527   :  { %2145 = vmatprep.subr.bf16.mxu1 %v2542_v1 }
 0x529   :  { %2130 = vmatpush3.bf16.msra.mxu0 %v2753_v61 }
 0x52a   :  { %2131 = vmatprep.subr.bf16.mxu0 %v2542_v1 }
 0x52d   :  { %2132 = vmatpush3.bf16.msra.mxu0 %v2762_v3 }
 0x52e   :  { %2157 = vmatprep.subr.bf16.mxu0 %v2542_v1 }
 0x5f3   :  { %v472_v16 = vpop.f32.mrb[8].mxu0 }
 0x5f4   :  { %v479_v17 = vrot.slane %v472_v16, 4  ;;  %v397_v22 = vpop.f32.mrb[4].mxu1  ;;  %v2123_v23 = vpop.f32.mrb[9].mxu0 }
 0x5f5   :  { %v398_v24 = vadd.f32 %v2735_v27, %v397_v22  ;;  %v2115_v25 = vpop.f32.mrb[5].mxu1  ;;  %v475_v26 = vpop.f32.mrb[10].mxu0 }
 0x5f6   :  { %v481_v28 = vadd.f32 %v479_v17, %v2681_v5  ;;  %v400_v29 = vpop.f32.mrb[6].mxu1  ;;  %v2124_v30 = vpop.f32.mrb[11].mxu0 }
 0x5f7   :  { %2365 = vtanh.f32 %v398_v24  ;;  %v2116_v31 = vpop.f32.mrb[7].mxu1  ;;  %v403_v34 = vsub.f32 0.0, %v398_v24 }
 0x5f8   :  { %2367 = vtanh.f32 %v481_v28  ;;  %v482_v35 = vsub.f32 0.0, %v481_v28 }
 0x5f9   :  { %v404_v36 = vmul.f32 1.442695, %v403_v34 }
 0x5fa   :  { %v483_v37 = vmul.f32 1.442695, %v482_v35 }
 0x5fb   :  { %2369 = vpow2.f32 %v404_v36 }
 0x5fc   :  { %2371 = vpow2.f32 %v483_v37 }
 0x601   :  { %v2366_v32 = vpop.eup %2365 }
 0x602   :  { %v2368_v33 = vpop.eup %2367  ;;  %415 = vrot.lane.b32.xlu0 %v2366_v32, %s2544_s30 }
 0x603   :  { %493 = vrot.lane.b32.xlu1 %v2368_v33, %s2544_s30 }
 0x605   :  { %v2370_v38 = vpop.eup %2369 }
 0x606   :  { %410 = vrot.lane.b32.xlu0 %v2742_v52, %s2546_s28  ;;  %v2372_v39 = vpop.eup %2371  ;;  %v406_v40 = vadd.f32 1.0, %v2370_v38 }
 0x607   :  { %v485_v41 = vadd.f32 1.0, %v2372_v39 }
 0x608   :  { %2373 = vrcp.f32 %v406_v40 }
 0x609   :  { %2375 = vrcp.f32 %v485_v41 }
 0x612   :  { %v2374_v42 = vpop.eup %2373 }
 0x613   :  { %v2376_v44 = vpop.eup %2375 }
 0x614   :  { %v491_v52 = vmul.f32 %v2376_v44, %v489_v49 }
 0x674   :  { %v416_v43 = vpop.permute.xlu0 %415 }
 0x675   :  { %v418_v45 = vmul.f32 %v2374_v42, %v416_v43  ;;  %v494_v46 = vpop.permute.xlu1 %493 }
 0x676   :  { %v496_v47 = vmul.f32 %v2376_v44, %v494_v46 }
 0x677   :  { %420 = vrot.lane.b32.xlu1 %v418_v45, %s2546_s28 }
 0x678   :  { %498 = vrot.lane.b32.xlu0 %v496_v47, %s2546_s28  ;;  %v411_v48 = vpop.permute.xlu0 %410 }
 0x679   :  { %v413_v50 = vmul.f32 %v2374_v42, %v411_v48 }
 0x6e9   :  { %v421_v51 = vpop.permute.xlu1 %420 }
 0x6ea   :  { %v2796_v53 = vadd.f32 %v421_v51, %v413_v50  ;;  %v499_v54 = vpop.permute.xlu0 %498 }
 0x6eb   :  { %v2798_v55 = vadd.f32 %v499_v54, %v491_v52 }
 0x6ec   :  { %2377 = vtanh.f32 %v2796_v53 }
 0x6ed   :  { %2379 = vtanh.f32 %v2798_v55  ;;  %v646_v43 = vrot.slane %v2798_v55, 6 }
 0x6f6   :  { %v2378_v56 = vpop.eup %2377 }
 0x6f7   :  { %v2380_v57 = vpop.eup %2379  ;;  %426 = vrot.lane.b32.xlu1 %v2378_v56, %s2544_s30 }
 0x6f8   :  { %504 = vrot.lane.b32.xlu0 %v2380_v57, %s2544_s30 }
 0x769   :  { %v427_v58 = vpop.permute.xlu1 %426 }
 0x76a   :  { %v429_v59 = vmul.f32 %v2374_v42, %v427_v58  ;;  %v505_v60 = vpop.permute.xlu0 %504 }
 0x76b   :  { %v507_v62 = vmul.f32 %v2376_v44, %v505_v60 }
 0x76c   :  { %v513_v63 = vrot.slane %v429_v59, 4 }
 0x76d   :  { %v587_v0 = vpack.c.bf16 %v507_v62, %v507_v62  ;;  %509 = vrot.lane.b32.xlu1 %v507_v62, %s2546_s28 }
 0x76e   :  { %514 = vrot.lane.b32.xlu0 %v513_v63, %s2544_s30 }
 0x76f   :  { %v589_v2 = vrot.slane %v587_v0, 2 }
 0x771   :  { %590 = vrot.lane.b32.xlu1 %v589_v2, %s2546_s28 }
 0x7df   :  { %v510_v4 = vpop.permute.xlu1 %509 }
 0x7e0   :  { %v515_v6 = vpop.permute.xlu0 %514 }
 0x7e1   :  { %v517_v7 = vsel %vm189_vm2, %v510_v4, %v515_v6 }
 0x7e2   :  { %v518_v9 = vpack.c.bf16 %v517_v7, %v517_v7 }
 0x7e3   :  { %v591_v10 = vpop.permute.xlu1 %590 }
 0x7e4   :  { %v520_v11 = vrot.slane %v518_v9, 2  ;;  %2142 = vmatmul.mubr.msk.bf16.vlgmr.msra.gmra.mrb[8].mxu1 %vm189_vm2, %v591_v10 }
 0x7e5   :  { %2146 = vmatpush3.bf16.msra.mxu1 %v2696_v19  ;;  %2153 = vmatprep.mubr.msk.bf16.mxu1 %vm2543_vm0, %v2542_v1 }
 0x7e6   :  { %2134 = vmatmul.mubr.msk.bf16.vlgmr.msra.gmra.mrb[12].mxu0 %vm359_vm3, %v520_v11  ;;  %2147 = vmatprep.subr.bf16.mxu1 %v2542_v1 }
 0x7e7   :  { %2158 = vmatpush3.bf16.msra.mxu0 %v2691_v18  ;;  %2161 = vmatprep.mubr.msk.bf16.mxu0 %vm2543_vm0, %v2542_v1 }
 0x7e8   :  { %2159 = vmatprep.subr.bf16.mxu0 %v2542_v1 }
 0x7e9   :  { %2148 = vmatpush3.bf16.msra.mxu1 %v2708_v21 }
 0x7ea   :  { %2149 = vmatprep.subr.bf16.mxu1 %v2542_v1 }
 0x7eb   :  { %2160 = vmatpush3.bf16.msra.mxu0 %v2703_v20 }
 0x7ec   :  { %2165 = vmatprep.subr.bf16.mxu0 %v2542_v1 }
 0x7ed   :  { %2150 = vmatpush3.bf16.msra.mxu1 %v2753_v61 }
 0x7ee   :  { %2151 = vmatprep.subr.bf16.mxu1 %v2542_v1 }
 0x7f1   :  { %2152 = vmatpush3.bf16.msra.mxu1 %v2762_v3 }
 0x7f2   :  { %2177 = vmatprep.subr.bf16.mxu1 %v2542_v1 }
 0x8b7   :  { %v629_v12 = vpop.f32.mrb[8].mxu1 }
 0x8b8   :  { %v636_v13 = vrot.slane %v629_v12, 2  ;;  %v2143_v14 = vpop.f32.mrb[9].mxu1 }
 0x8b9   :  { %v558_v15 = vpop.f32.mrb[12].mxu0  ;;  %v632_v16 = vpop.f32.mrb[10].mxu1 }
 0x8ba   :  { %v638_v17 = vadd.f32 %v636_v13, %v2681_v5  ;;  %v559_v22 = vadd.f32 %v2735_v27, %v558_v15  ;;  %v2135_v23 = vpop.f32.mrb[13].mxu0  ;;  %v2144_v24 = vpop.f32.mrb[11].mxu1 }
 0x8bb   :  { %v561_v25 = vpop.f32.mrb[14].mxu0 }
 0x8bc   :  { %2381 = vtanh.f32 %v638_v17  ;;  %v2136_v26 = vpop.f32.mrb[15].mxu0  ;;  %v639_v30 = vsub.f32 0.0, %v638_v17  ;;  %v564_v31 = vsub.f32 0.0, %v559_v22 }
 0x8bd   :  { %2383 = vtanh.f32 %v559_v22 }
 0x8be   :  { %v640_v32 = vmul.f32 1.442695, %v639_v30  ;;  %v565_v33 = vmul.f32 1.442695, %v564_v31 }
 0x8c0   :  { %2385 = vpow2.f32 %v640_v32 }
 0x8c1   :  { %2387 = vpow2.f32 %v565_v33 }
 0x8c6   :  { %v2382_v28 = vpop.eup %2381 }
 0x8c7   :  { %v2384_v29 = vpop.eup %2383  ;;  %650 = vrot.lane.b32.xlu1 %v2382_v28, %s2544_s30 }
 0x8c8   :  { %572 = vrot.lane.b32.xlu0 %v2384_v29, %s2544_s30 }
 0x8ca   :  { %v2386_v5 = vpop.eup %2385 }
 0x8cb   :  { %v2388_v34 = vpop.eup %2387  ;;  %v642_v35 = vadd.f32 1.0, %v2386_v5 }
 0x8cc   :  { %v567_v36 = vadd.f32 1.0, %v2388_v34 }
 0x8cd   :  { %2389 = vrcp.f32 %v642_v35 }
 0x8ce   :  { %2391 = vrcp.f32 %v567_v36 }
 0x8d7   :  { %v2390_v37 = vpop.eup %2389 }
 0x8d8   :  { %v2392_v39 = vpop.eup %2391  ;;  %v648_v44 = vmul.f32 %v2390_v37, %v646_v43 }
 0x8d9   :  { %v570_v46 = vmul.f32 %v2392_v39, %v2796_v53 }
 0x939   :  { %v651_v38 = vpop.permute.xlu1 %650 }
 0x93a   :  { %v653_v40 = vmul.f32 %v2390_v37, %v651_v38  ;;  %v573_v41 = vpop.permute.xlu0 %572 }
 0x93b   :  { %v575_v42 = vmul.f32 %v2392_v39, %v573_v41 }
 0x93c   :  { %655 = vrot.lane.b32.xlu1 %v653_v40, %s2546_s28 }
 0x93d   :  { %577 = vrot.lane.b32.xlu0 %v575_v42, %s2546_s28 }
 0x9ae   :  { %v656_v45 = vpop.permute.xlu1 %655 }
 0x9af   :  { %v2834_v47 = vadd.f32 %v656_v45, %v648_v44  ;;  %v578_v48 = vpop.permute.xlu0 %577 }
 0x9b0   :  { %v2836_v49 = vadd.f32 %v578_v48, %v570_v46 }
 0x9b1   :  { %2393 = vtanh.f32 %v2834_v47  ;;  %v800_v36 = vrot.slane %v2834_v47, 6 }
 0x9b2   :  { %2395 = vtanh.f32 %v2836_v49 }
 0x9bb   :  { %v2394_v50 = vpop.eup %2393 }
 0x9bc   :  { %v2396_v51 = vpop.eup %2395  ;;  %661 = vrot.lane.b32.xlu1 %v2394_v50, %s2544_s30 }
 0x9bd   :  { %583 = vrot.lane.b32.xlu0 %v2396_v51, %s2544_s30 }
 0xa2e   :  { %v662_v52 = vpop.permute.xlu1 %661 }
 0xa2f   :  { %v664_v54 = vmul.f32 %v2390_v37, %v662_v52  ;;  %v584_v55 = vpop.permute.xlu0 %583 }
 0xa30   :  { %v586_v56 = vmul.f32 %v2392_v39, %v584_v55 }
 0xa31   :  { %v744_v53 = vpack.c.bf16 %v664_v54, %v664_v54  ;;  %666 = vrot.lane.b32.xlu0 %v664_v54, %s2546_s28 }
 0xa32   :  { %v670_v57 = vrot.slane %v586_v56, 2 }
 0xa33   :  { %v746_v58 = vrot.slane %v744_v53, 3 }
 0xa34   :  { %671 = vrot.lane.b32.xlu1 %v670_v57, %s2544_s30 }
 0xa35   :  { %747 = vrot.lane.b32.xlu0 %v746_v58, %s2546_s28 }
 0xaa3   :  { %v667_v59 = vpop.permute.xlu0 %666 }
 0xaa6   :  { %v672_v60 = vpop.permute.xlu1 %671 }
 0xaa7   :  { %v674_v62 = vsel %vm189_vm2, %v667_v59, %v672_v60  ;;  %v748_v63 = vpop.permute.xlu0 %747 }
 0xaa8   :  { %v675_v0 = vpack.c.bf16 %v674_v62, %v674_v62  ;;  %2162 = vmatmul.mubr.msk.bf16.vlgmr.msra.gmra.mrb[16].mxu0 %vm189_vm2, %v748_v63 }
 0xaa9   :  { %2166 = vmatpush3.bf16.msra.mxu0 %v2696_v19  ;;  %2173 = vmatprep.mubr.msk.bf16.mxu0 %vm2543_vm0, %v2542_v1 }
 0xaaa   :  { %v677_v2 = vrot.slane %v675_v0, 3  ;;  %2167 = vmatprep.subr.bf16.mxu0 %v2542_v1 }
 0xaac   :  { %2154 = vmatmul.mubr.msk.bf16.vlgmr.msra.gmra.mrb[12].mxu1 %vm359_vm3, %v677_v2 }
 0xaad   :  { %2168 = vmatpush3.bf16.msra.mxu0 %v2708_v21  ;;  %2178 = vmatpush3.bf16.msra.mxu1 %v2691_v18 }
 0xaae   :  { %2169 = vmatprep.subr.bf16.mxu0 %v2542_v1  ;;  %2179 = vmatprep.subr.bf16.mxu1 %v2542_v1 }
 0xaaf   :  { %2181 = vmatprep.mubr.msk.bf16.mxu1 %vm2543_vm0, %v2542_v1 }
 0xab1   :  { %2170 = vmatpush3.bf16.msra.mxu0 %v2753_v61  ;;  %2180 = vmatpush3.bf16.msra.mxu1 %v2703_v20 }
 0xab2   :  { %2171 = vmatprep.subr.bf16.mxu0 %v2542_v1  ;;  %2185 = vmatprep.subr.bf16.mxu1 %v2542_v1 }
 0xab5   :  { %2172 = vmatpush3.bf16.msra.mxu0 %v2762_v3 }
 0xab6   :  { %2197 = vmatprep.subr.bf16.mxu0 %v2542_v1 }
 0xb7b   :  { %v786_v4 = vpop.f32.mrb[16].mxu0 }
 0xb7c   :  { %v792_v6 = vadd.f32 %v786_v4, %v2683_v8  ;;  %v2163_v7 = vpop.f32.mrb[17].mxu0 }
 0xb7d   :  { %v789_v9 = vpop.f32.mrb[18].mxu0 }
 0xb7e   :  { %2397 = vtanh.f32 %v792_v6  ;;  %v2164_v10 = vpop.f32.mrb[19].mxu0  ;;  %v793_v22 = vsub.f32 0.0, %v792_v6 }
 0xb7f   :  { %v715_v11 = vpop.f32.mrb[12].mxu1 }
 0xb80   :  { %v716_v12 = vadd.f32 %v2735_v27, %v715_v11  ;;  %v2155_v13 = vpop.f32.mrb[13].mxu1  ;;  %v794_v23 = vmul.f32 1.442695, %v793_v22 }
 0xb81   :  { %v718_v14 = vpop.f32.mrb[14].mxu1 }
 0xb82   :  { %v2156_v15 = vpop.f32.mrb[15].mxu1  ;;  %2399 = vtanh.f32 %v716_v12  ;;  %v721_v24 = vsub.f32 0.0, %v716_v12 }
 0xb83   :  { %2401 = vpow2.f32 %v794_v23 }
 0xb84   :  { %v722_v25 = vmul.f32 1.442695, %v721_v24 }
 0xb86   :  { %2403 = vpow2.f32 %v722_v25 }
 0xb88   :  { %v2398_v16 = vpop.eup %2397 }
 0xb89   :  { %804 = vrot.lane.b32.xlu0 %v2398_v16, %s2544_s30 }
 0xb8c   :  { %v2400_v17 = vpop.eup %2399 }
 0xb8d   :  { %729 = vrot.lane.b32.xlu1 %v2400_v17, %s2544_s30  ;;  %v2402_v26 = vpop.eup %2401 }
 0xb8e   :  { %v796_v28 = vadd.f32 1.0, %v2402_v26 }
 0xb90   :  { %v2404_v29 = vpop.eup %2403  ;;  %2405 = vrcp.f32 %v796_v28 }
 0xb91   :  { %v724_v30 = vadd.f32 1.0, %v2404_v29 }
 0xb93   :  { %2407 = vrcp.f32 %v724_v30 }
 0xb9a   :  { %v2406_v31 = vpop.eup %2405 }
 0xb9b   :  { %v802_v37 = vmul.f32 %v2406_v31, %v800_v36 }
 0xb9d   :  { %v2408_v5 = vpop.eup %2407 }
 0xb9e   :  { %v727_v40 = vmul.f32 %v2408_v5, %v2836_v49 }
 0xbfb   :  { %v805_v32 = vpop.permute.xlu0 %804 }
 0xbfc   :  { %v807_v33 = vmul.f32 %v2406_v31, %v805_v32 }
 0xbfe   :  { %809 = vrot.lane.b32.xlu0 %v807_v33, %s2546_s28 }
 0xbff   :  { %v730_v34 = vpop.permute.xlu1 %729 }
 0xc00   :  { %v732_v35 = vmul.f32 %v2408_v5, %v730_v34 }
 0xc02   :  { %734 = vrot.lane.b32.xlu1 %v732_v35, %s2546_s28 }
 0xc70   :  { %v810_v38 = vpop.permute.xlu0 %809 }
 0xc71   :  { %v2871_v39 = vadd.f32 %v810_v38, %v802_v37 }
 0xc73   :  { %2409 = vtanh.f32 %v2871_v39  ;;  %v953_v28 = vrot.slane %v2871_v39, 6 }
 0xc74   :  { %v735_v41 = vpop.permute.xlu1 %734 }
 0xc75   :  { %v2875_v42 = vadd.f32 %v735_v41, %v727_v40 }
 0xc77   :  { %2411 = vtanh.f32 %v2875_v42 }
 0xc7d   :  { %v2410_v43 = vpop.eup %2409 }
 0xc7e   :  { %815 = vrot.lane.b32.xlu0 %v2410_v43, %s2544_s30 }
 0xc81   :  { %v2412_v44 = vpop.eup %2411 }
 0xc82   :  { %740 = vrot.lane.b32.xlu1 %v2412_v44, %s2544_s30 }
 0xcf0   :  { %v816_v45 = vpop.permute.xlu0 %815 }
 0xcf1   :  { %v818_v46 = vmul.f32 %v2406_v31, %v816_v45 }
 0xcf3   :  { %820 = vrot.lane.b32.xlu1 %v818_v46, %s2546_s28  ;;  %v895_v47 = vpack.c.bf16 %v818_v46, %v818_v46 }
 0xcf4   :  { %v741_v48 = vpop.permute.xlu1 %740 }
 0xcf5   :  { %v743_v50 = vmul.f32 %v2408_v5, %v741_v48 }
 0xcf7   :  { %897 = vrot.lane.b32.xlu1 %v895_v47, %s2546_s28  ;;  %824 = vrot.lane.b32.xlu0 %v743_v50, %s2544_s30 }
 0xd65   :  { %v821_v49 = vpop.permute.xlu1 %820 }
 0xd69   :  { %v898_v51 = vpop.permute.xlu1 %897  ;;  %v825_v52 = vpop.permute.xlu0 %824 }
 0xd6a   :  { %2182 = vmatmul.mubr.msk.bf16.vlgmr.msra.gmra.mrb[16].mxu1 %vm189_vm2, %v898_v51  ;;  %v827_v54 = vsel %vm189_vm2, %v821_v49, %v825_v52 }
 0xd6b   :  { %2186 = vmatpush3.bf16.msra.mxu1 %v2696_v19  ;;  %2193 = vmatprep.mubr.msk.bf16.mxu1 %vm2543_vm0, %v2542_v1  ;;  %v828_v55 = vpack.c.bf16 %v827_v54, %v827_v54 }
 0xd6c   :  { %2187 = vmatprep.subr.bf16.mxu1 %v2542_v1 }
 0xd6d   :  { %2174 = vmatmul.mubr.msk.bf16.vlgmr.msra.gmra.mrb[20].mxu0 %vm359_vm3, %v828_v55 }
 0xd6e   :  { %2198 = vmatpush3.bf16.msra.mxu0 %v2691_v18  ;;  %2201 = vmatprep.mubr.msk.bf16.mxu0 %vm2543_vm0, %v2542_v1 }
 0xd6f   :  { %2188 = vmatpush3.bf16.msra.mxu1 %v2708_v21  ;;  %2199 = vmatprep.subr.bf16.mxu0 %v2542_v1 }
 0xd70   :  { %2189 = vmatprep.subr.bf16.mxu1 %v2542_v1 }
 0xd72   :  { %2200 = vmatpush3.bf16.msra.mxu0 %v2703_v20 }
 0xd73   :  { %2190 = vmatpush3.bf16.msra.mxu1 %v2753_v61  ;;  %2205 = vmatprep.subr.bf16.mxu0 %v2542_v1 }
 0xd74   :  { %2191 = vmatprep.subr.bf16.mxu1 %v2542_v1 }
 0xd77   :  { %2192 = vmatpush3.bf16.msra.mxu1 %v2762_v3 }
 0xd78   :  { %2217 = vmatprep.subr.bf16.mxu1 %v2542_v1 }
 0xe3d   :  { %v936_v56 = vpop.f32.mrb[16].mxu1 }
 0xe3e   :  { %v943_v53 = vrot.slane %v936_v56, 6  ;;  %v2183_v57 = vpop.f32.mrb[17].mxu1 }
 0xe3f   :  { %v939_v58 = vpop.f32.mrb[18].mxu1 }
 0xe40   :  { %v945_v59 = vadd.f32 %v943_v53, %v2683_v8  ;;  %v2184_v60 = vpop.f32.mrb[19].mxu1  ;;  %v866_v62 = vpop.f32.mrb[20].mxu0 }
 0xe41   :  { %v867_v63 = vadd.f32 %v2735_v27, %v866_v62  ;;  %v2175_v0 = vpop.f32.mrb[21].mxu0 }
 0xe42   :  { %2413 = vtanh.f32 %v945_v59  ;;  %v869_v2 = vpop.f32.mrb[22].mxu0  ;;  %v946_v9 = vsub.f32 0.0, %v945_v59 }
 0xe43   :  { %2415 = vtanh.f32 %v867_v63  ;;  %v2176_v4 = vpop.f32.mrb[23].mxu0  ;;  %v872_v10 = vsub.f32 0.0, %v867_v63 }
 0xe44   :  { %v947_v11 = vmul.f32 1.442695, %v946_v9 }
 0xe45   :  { %v873_v12 = vmul.f32 1.442695, %v872_v10 }
 0xe46   :  { %2417 = vpow2.f32 %v947_v11 }
 0xe47   :  { %2419 = vpow2.f32 %v873_v12 }
 0xe4c   :  { %v2414_v6 = vpop.eup %2413 }
 0xe4d   :  { %957 = vrot.lane.b32.xlu1 %v2414_v6, %s2544_s30  ;;  %v2416_v7 = vpop.eup %2415 }
 0xe4e   :  { %880 = vrot.lane.b32.xlu0 %v2416_v7, %s2544_s30 }
 0xe50   :  { %v2418_v13 = vpop.eup %2417 }
 0xe51   :  { %v2420_v14 = vpop.eup %2419  ;;  %v949_v15 = vadd.f32 1.0, %v2418_v13 }
 0xe52   :  { %v875_v16 = vadd.f32 1.0, %v2420_v14 }
 0xe53   :  { %2421 = vrcp.f32 %v949_v15 }
 0xe54   :  { %2423 = vrcp.f32 %v875_v16 }
 0xe5d   :  { %v2422_v17 = vpop.eup %2421 }
 0xe5e   :  { %v2424_v24 = vpop.eup %2423  ;;  %v955_v29 = vmul.f32 %v2422_v17, %v953_v28 }
 0xe5f   :  { %v878_v32 = vmul.f32 %v2424_v24, %v2875_v42 }
 0xebf   :  { %v958_v22 = vpop.permute.xlu1 %957 }
 0xec0   :  { %v960_v23 = vmul.f32 %v2422_v17, %v958_v22  ;;  %v881_v25 = vpop.permute.xlu0 %880 }
 0xec1   :  { %v883_v26 = vmul.f32 %v2424_v24, %v881_v25 }
 0xec2   :  { %962 = vrot.lane.b32.xlu1 %v960_v23, %s2546_s28 }
 0xec3   :  { %885 = vrot.lane.b32.xlu0 %v883_v26, %s2546_s28 }
 0xf34   :  { %v963_v30 = vpop.permute.xlu1 %962 }
 0xf35   :  { %v2909_v31 = vadd.f32 %v963_v30, %v955_v29  ;;  %v886_v33 = vpop.permute.xlu0 %885 }
 0xf36   :  { %v2913_v5 = vadd.f32 %v886_v33, %v878_v32 }
 0xf37   :  { %2425 = vtanh.f32 %v2909_v31  ;;  %v1110_v13 = vrot.slane %v2909_v31, 6 }
 0xf38   :  { %2427 = vtanh.f32 %v2913_v5 }
 0xf41   :  { %v2426_v34 = vpop.eup %2425 }
 0xf42   :  { %968 = vrot.lane.b32.xlu1 %v2426_v34, %s2544_s30  ;;  %v2428_v35 = vpop.eup %2427 }
 0xf43   :  { %891 = vrot.lane.b32.xlu0 %v2428_v35, %s2544_s30 }
 0xfb4   :  { %v969_v36 = vpop.permute.xlu1 %968 }
 0xfb5   :  { %v971_v37 = vmul.f32 %v2422_v17, %v969_v36  ;;  %v892_v38 = vpop.permute.xlu0 %891 }
 0xfb6   :  { %v894_v40 = vmul.f32 %v2424_v24, %v892_v38 }
 0xfb7   :  { %v1051_v39 = vpack.c.bf16 %v971_v37, %v971_v37  ;;  %973 = vrot.lane.b32.xlu0 %v971_v37, %s2546_s28  ;;  %v2491_v37 = vld [vmem:[%s3150_s6] sm:$0xff]  }
 0xfb8   :  { %v977_v42 = vrot.slane %v894_v40, 6  ;;  %v2492_v40 = vld [vmem:[%s3150_s6 + $0x8] sm:$0xff]  }
 0xfb9   :  { %v1053_v41 = vrot.slane %v1051_v39, 1 }
 0xfba   :  { %978 = vrot.lane.b32.xlu1 %v977_v42, %s2544_s30 }
 0xfbb   :  { %1054 = vrot.lane.b32.xlu0 %v1053_v41, %s2546_s28 }
0x1029   :  { %v974_v43 = vpop.permute.xlu0 %973 }
0x102c   :  { %v979_v44 = vpop.permute.xlu1 %978 }
0x102d   :  { %v1055_v45 = vpop.permute.xlu0 %1054  ;;  %v981_v46 = vsel %vm189_vm2, %v974_v43, %v979_v44 }
0x102e   :  { %2202 = vmatmul.mubr.msk.bf16.vlgmr.msra.gmra.mrb[24].mxu0 %vm189_vm2, %v1055_v45  ;;  %v982_v47 = vpack.c.bf16 %v981_v46, %v981_v46 }
0x102f   :  { %2206 = vmatpush3.bf16.msra.mxu0 %v2696_v19  ;;  %2213 = vmatprep.mubr.msk.bf16.mxu0 %vm2543_vm0, %v2542_v1 }
0x1030   :  { %2207 = vmatprep.subr.bf16.mxu0 %v2542_v1  ;;  %v984_v48 = vrot.slane %v982_v47, 1 }
0x1032   :  { %2194 = vmatmul.mubr.msk.bf16.vlgmr.msra.gmra.mrb[20].mxu1 %vm359_vm3, %v984_v48 }
0x1033   :  { %2208 = vmatpush3.bf16.msra.mxu0 %v2708_v21  ;;  %2218 = vmatpush3.bf16.msra.mxu1 %v2691_v18 }
0x1034   :  { %2209 = vmatprep.subr.bf16.mxu0 %v2542_v1  ;;  %2219 = vmatprep.subr.bf16.mxu1 %v2542_v1 }
0x1035   :  { %2221 = vmatprep.mubr.msk.bf16.mxu1 %vm2543_vm0, %v2542_v1 }
0x1037   :  { %2210 = vmatpush3.bf16.msra.mxu0 %v2753_v61  ;;  %2220 = vmatpush3.bf16.msra.mxu1 %v2703_v20 }
0x1038   :  { %2211 = vmatprep.subr.bf16.mxu0 %v2542_v1  ;;  %2225 = vmatprep.subr.bf16.mxu1 %v2542_v1 }
0x103b   :  { %2212 = vmatpush3.bf16.msra.mxu0 %v2762_v3 }
0x103c   :  { %2237 = vmatprep.subr.bf16.mxu0 %v2542_v1 }
0x1101   :  { %v1093_v18 = vpop.f32.mrb[24].mxu0 }
0x1102   :  { %v1100_v19 = vrot.slane %v1093_v18, 4  ;;  %v2203_v21 = vpop.f32.mrb[25].mxu0 }
0x1103   :  { %v1096_v50 = vpop.f32.mrb[26].mxu0 }
0x1104   :  { %v1102_v49 = vadd.f32 %v1100_v19, %v2683_v8  ;;  %v2204_v51 = vpop.f32.mrb[27].mxu0 }
0x1105   :  { %v1022_v52 = vpop.f32.mrb[20].mxu1 }
0x1106   :  { %2429 = vtanh.f32 %v1102_v49  ;;  %v1023_v54 = vadd.f32 %v2735_v27, %v1022_v52  ;;  %v2195_v20 = vpop.f32.mrb[21].mxu1  ;;  %v1103_v58 = vsub.f32 0.0, %v1102_v49 }
0x1107   :  { %v1025_v55 = vpop.f32.mrb[22].mxu1 }
0x1108   :  { %2431 = vtanh.f32 %v1023_v54  ;;  %v2196_v56 = vpop.f32.mrb[23].mxu1  ;;  %v1028_v59 = vsub.f32 0.0, %v1023_v54  ;;  %v1104_v60 = vmul.f32 1.442695, %v1103_v58 }
0x110a   :  { %v1029_v62 = vmul.f32 1.442695, %v1028_v59  ;;  %2433 = vpow2.f32 %v1104_v60 }
0x110c   :  { %2435 = vpow2.f32 %v1029_v62 }
0x1110   :  { %v2430_v53 = vpop.eup %2429 }
0x1111   :  { %1114 = vrot.lane.b32.xlu0 %v2430_v53, %s2544_s30 }
0x1112   :  { %v2432_v57 = vpop.eup %2431 }
0x1113   :  { %1036 = vrot.lane.b32.xlu1 %v2432_v57, %s2544_s30 }
0x1114   :  { %v2434_v63 = vpop.eup %2433 }
0x1115   :  { %v1106_v2 = vadd.f32 1.0, %v2434_v63 }
0x1116   :  { %v2436_v0 = vpop.eup %2435 }
0x1117   :  { %v1031_v4 = vadd.f32 1.0, %v2436_v0  ;;  %2437 = vrcp.f32 %v1106_v2 }
0x1119   :  { %2439 = vrcp.f32 %v1031_v4 }
0x1121   :  { %v2438_v6 = vpop.eup %2437 }
0x1122   :  { %v1112_v14 = vmul.f32 %v2438_v6, %v1110_v13 }
0x1123   :  { %v2440_v10 = vpop.eup %2439 }
0x1124   :  { %v1034_v17 = vmul.f32 %v2440_v10, %v2913_v5 }
0x1183   :  { %v1115_v7 = vpop.permute.xlu0 %1114 }
0x1184   :  { %v1117_v9 = vmul.f32 %v2438_v6, %v1115_v7 }
0x1185   :  { %v1037_v11 = vpop.permute.xlu1 %1036 }
0x1186   :  { %1119 = vrot.lane.b32.xlu0 %v1117_v9, %s2546_s28  ;;  %v1039_v12 = vmul.f32 %v2440_v10, %v1037_v11 }
0x1188   :  { %1041 = vrot.lane.b32.xlu1 %v1039_v12, %s2546_s28 }
0x11f8   :  { %v1120_v15 = vpop.permute.xlu0 %1119 }
0x11f9   :  { %v2947_v16 = vadd.f32 %v1120_v15, %v1112_v14 }
0x11fa   :  { %v1042_v22 = vpop.permute.xlu1 %1041 }
0x11fb   :  { %2441 = vtanh.f32 %v2947_v16  ;;  %v2951_v23 = vadd.f32 %v1042_v22, %v1034_v17  ;;  %v1267_v60 = vrot.slane %v2947_v16, 6 }
0x11fd   :  { %2443 = vtanh.f32 %v2951_v23 }
0x1205   :  { %v2442_v24 = vpop.eup %2441 }
0x1206   :  { %1125 = vrot.lane.b32.xlu0 %v2442_v24, %s2544_s30 }
0x1207   :  { %v2444_v25 = vpop.eup %2443 }
0x1208   :  { %1047 = vrot.lane.b32.xlu1 %v2444_v25, %s2544_s30  ;;  %v2493_v25 = vld [vmem:[%s3151_s7] ss:$0 sm:$0xff] }
0x1278   :  { %v1126_v26 = vpop.permute.xlu0 %1125 }
0x1279   :  { %v1128_v28 = vmul.f32 %v2438_v6, %v1126_v26 }
0x127a   :  { %v1048_v30 = vpop.permute.xlu1 %1047 }
0x127b   :  { %v1208_v29 = vpack.c.bf16 %v1128_v28, %v1128_v28  ;;  %1130 = vrot.lane.b32.xlu1 %v1128_v28, %s2546_s28  ;;  %v1050_v31 = vmul.f32 %v2440_v10, %v1048_v30 }
0x127d   :  { %v1210_v32 = vrot.slane %v1208_v29, 2  ;;  %v1134_v33 = vrot.slane %v1050_v31, 4  ;;  %v2322_v31 = vld [vmem:[%s3152_s8] sm:$0xff]  }
0x127f   :  { %1211 = vrot.lane.b32.xlu1 %v1210_v32, %s2546_s28  ;;  %1135 = vrot.lane.b32.xlu0 %v1134_v33, %s2544_s30  ;;  %v2323_v32 = vld [vmem:[%s3152_s8 + $0x8] sm:$0xff]   ;;  %v2324_v33 = vld [vmem:[%s3152_s8 + $0x10] sm:$0xff]  }
0x12ed   :  { %v1131_v5 = vpop.permute.xlu1 %1130 }
0x12f1   :  { %v1212_v34 = vpop.permute.xlu1 %1211  ;;  %v1136_v35 = vpop.permute.xlu0 %1135 }
0x12f2   :  { %2222 = vmatmul.mubr.msk.bf16.vlgmr.msra.gmra.mrb[24].mxu1 %vm189_vm2, %v1212_v34  ;;  %v1138_v36 = vsel %vm189_vm2, %v1131_v5, %v1136_v35  ;;  %v2325_v34 = vld [vmem:[%s3152_s8 + $0x18] sm:$0xff]   ;;  %v1365_v35 = vld [vmem:[%s3177_s2] sm:$0x1] }
0x12f3   :  { %2226 = vmatpush3.bf16.msra.mxu1 %v2491_v37  ;;  %2233 = vmatprep.mubr.msk.bf16.mxu1 %vm2543_vm0, %v2542_v1  ;;  %v1139_v38 = vpack.c.bf16 %v1138_v36, %v1138_v36 }
0x12f4   :  { %2227 = vmatprep.subr.bf16.mxu1 %v2542_v1 }
0x12f5   :  { %v1141_v39 = vrot.slane %v1139_v38, 2 }
0x12f7   :  { %2228 = vmatpush3.bf16.msra.mxu1 %v2492_v40  ;;  %2214 = vmatmul.mubr.msk.bf16.vlgmr.msra.gmra.mrb[28].mxu0 %vm359_vm3, %v1141_v39 }
0x12f8   :  { %2229 = vmatprep.subr.bf16.mxu1 %v2542_v1  ;;  %2245 = vmatprep.mubr.msk.bf16.mxu0 %vm2543_vm0, %v2542_v1 }
0x12f9   :  { %2238 = vmatpush3.bf16.msra.mxu0 %v2322_v31 }
0x12fa   :  { %2239 = vmatprep.subr.bf16.mxu0 %v2542_v1 }
0x12fb   :  { %2230 = vmatpush3.bf16.msra.mxu1 %v2753_v61 }
0x12fc   :  { %2231 = vmatprep.subr.bf16.mxu1 %v2542_v1 }
0x12fd   :  { %2240 = vmatpush3.bf16.msra.mxu0 %v2323_v32 }
0x12fe   :  { %2241 = vmatprep.subr.bf16.mxu0 %v2542_v1 }
0x12ff   :  { %2232 = vmatpush3.bf16.msra.mxu1 %v2762_v3 }
0x1300   :  { %2249 = vmatprep.subr.bf16.mxu1 %v2542_v1 }
0x1301   :  { %2242 = vmatpush3.bf16.msra.mxu0 %v2324_v33 }
0x1302   :  { %2243 = vmatprep.subr.bf16.mxu0 %v2542_v1 }
0x1305   :  { %2244 = vmatpush3.bf16.msra.mxu0 %v2325_v34  ;;  %v1978_v34 = vld [vmem:[%s3157_s13] ss:$0 sm:$0xff] }
0x1306   :  { %2261 = vmatprep.subr.bf16.mxu0 %v2542_v1 }
0x1308   :  { %2246 = vmatmul.mubr.msk.bf16.vlgmr.msra.gmra.mrb[32].mxu0 %vm359_vm3, %v1365_v35 }
0x1309   :  { %2271 = vmatprep.mubr.msk.bf16.mxu0 %vm2543_vm0, %v2542_v1 }
0x13c5   :  { %v1250_v41 = vpop.f32.mrb[24].mxu1 }
0x13c6   :  { %v1257_v42 = vrot.slane %v1250_v41, 2  ;;  %v2223_v43 = vpop.f32.mrb[25].mxu1 }
0x13c7   :  { %v1253_v44 = vpop.f32.mrb[26].mxu1 }
0x13c8   :  { %v1259_v45 = vadd.f32 %v1257_v42, %v2683_v8  ;;  %v2224_v46 = vpop.f32.mrb[27].mxu1 }
0x13ca   :  { %2445 = vtanh.f32 %v1259_v45  ;;  %v1179_v47 = vpop.f32.mrb[28].mxu0  ;;  %v1260_v50 = vsub.f32 0.0, %v1259_v45 }
0x13cb   :  { %v1180_v48 = vadd.f32 %v2735_v27, %v1179_v47  ;;  %v2215_v18 = vpop.f32.mrb[29].mxu0 }
0x13cc   :  { %v1182_v19 = vpop.f32.mrb[30].mxu0  ;;  %v1261_v49 = vmul.f32 1.442695, %v1260_v50  ;;  %v1966_v50 = vld [vmem:[%s3153_s9] ss:$0 sm:$0xff]  ;;  %s3178_s9 = sld [smem:[#allocation10_spill]] }
0x13cd   :  { %v2216_v61 = vpop.f32.mrb[31].mxu0  ;;  %2447 = vtanh.f32 %v1180_v48  ;;  %v1185_v51 = vsub.f32 0.0, %v1180_v48  ;;  %v2326_v19 = vld [vmem:[%s3154_s10] sm:$0xff]  }
0x13ce   :  { %2449 = vpow2.f32 %v1261_v49  ;;  %v2327_v61 = vld [vmem:[%s3154_s10 + $0x8] sm:$0xff]   ;;  %v2329_v49 = vld [vmem:[%s3154_s10 + $0x18] sm:$0xff]  }
0x13cf   :  { %v1186_v8 = vmul.f32 1.442695, %v1185_v51 }
0x13d1   :  { %2451 = vpow2.f32 %v1186_v8 }
0x13d4   :  { %v2446_v21 = vpop.eup %2445 }
0x13d5   :  { %1271 = vrot.lane.b32.xlu1 %v2446_v21, %s2544_s30  ;;  %v2328_v21 = vld [vmem:[%s3154_s10 + $0x10] sm:$0xff]  }
0x13d7   :  { %v2448_v3 = vpop.eup %2447 }
0x13d8   :  { %1193 = vrot.lane.b32.xlu0 %v2448_v3, %s2544_s30  ;;  %v2450_v52 = vpop.eup %2449 }
0x13d9   :  { %v1263_v54 = vadd.f32 1.0, %v2450_v52 }
0x13db   :  { %v2452_v20 = vpop.eup %2451  ;;  %2453 = vrcp.f32 %v1263_v54  ;;  %v1442_v43 = vpop.f32.mrb[32].mxu0 }
0x13dc   :  { %v1188_v27 = vadd.f32 1.0, %v2452_v20  ;;  %v2247_v44 = vpop.f32.mrb[33].mxu0  ;;  %v1443_v51 = vadd.f32 %v1966_v50, %v1442_v43 }
0x13dd   :  { %v1445_v45 = vpop.f32.mrb[34].mxu0 }
0x13de   :  { %2455 = vrcp.f32 %v1188_v27  ;;  %v2248_v46 = vpop.f32.mrb[35].mxu0  ;;  %v1448_v8 = vmax.f32 %v1443_v51, 0.0  ;;  %v2338_v51 = vld [vmem:[%s3160_s16 + $0x8] sm:$0xff]  }
0x13e5   :  { %v2454_v55 = vpop.eup %2453 }
0x13e6   :  { %v1269_v62 = vmul.f32 %v2454_v55, %v1267_v60  ;;  %v1558_v60 = vlaneseq }
0x13e8   :  { %v2456_v57 = vpop.eup %2455 }
0x13e9   :  { %v1191_v2 = vmul.f32 %v2456_v57, %v2951_v23 }
0x1447   :  { %v1272_v56 = vpop.permute.xlu1 %1271 }
0x1448   :  { %v1274_v53 = vmul.f32 %v2454_v55, %v1272_v56 }
0x144a   :  { %1276 = vrot.lane.b32.xlu1 %v1274_v53, %s2546_s28  ;;  %v1194_v58 = vpop.permute.xlu0 %1193 }
0x144b   :  { %v1196_v59 = vmul.f32 %v2456_v57, %v1194_v58  ;;  %v2547_v58 = vmov 1966171168  }
0x144d   :  { %1198 = vrot.lane.b32.xlu0 %v1196_v59, %s2546_s28  ;;  %v1556_v59 = vunpack.c.l.s4 %v2547_v58 }
0x14bc   :  { %v1277_v63 = vpop.permute.xlu1 %1276 }
0x14bd   :  { %v1279_v0 = vadd.f32 %v1277_v63, %v1269_v62  ;;  %v1557_v62 = vunpack.c.0.s8 %v1556_v59  ;;  %v1559_v63 = vshrl.u32 %v1558_v60, 7 }
0x14bf   :  { %2457 = vtanh.f32 %v1279_v0  ;;  %v1199_v4 = vpop.permute.xlu0 %1198  ;;  %v1560_v0 = vsub.s32 %v1557_v62, %v1559_v63 }
0x14c0   :  { %v1201_v6 = vadd.f32 %v1199_v4, %v1191_v2  ;;  %v2330_v2 = vld [vmem:[%s3156_s12] sm:$0xff]  }
0x14c1   :  { %v1561_v4 = vrot.slane %v1365_v35, %v1560_v0  ;;  %2262 = vmatpush3.bf16.msra.mxu0 %v2330_v2 }
0x14c2   :  { %2459 = vtanh.f32 %v1201_v6  ;;  %2263 = vmatprep.subr.bf16.mxu0 %v2542_v1 }
0x14c9   :  { %v2458_v7 = vpop.eup %2457 }
0x14ca   :  { %1282 = vrot.lane.b32.xlu1 %v2458_v7, %s2544_s30  ;;  %v1568_v7 = vrot.slane %v1561_v4, %v1560_v0 }
0x14cc   :  { %v2460_v9 = vpop.eup %2459 }
0x14cd   :  { %1204 = vrot.lane.b32.xlu0 %v2460_v9, %s2544_s30  ;;  %v2332_v9 = vld [vmem:[%s3156_s12 + $0x10] sm:$0xff]  }
0x153c   :  { %v1283_v10 = vpop.permute.xlu1 %1282 }
0x153d   :  { %v1285_v11 = vmul.f32 %v2454_v55, %v1283_v10  ;;  %v1972_v10 = vld [vmem:[%s3155_s11] ss:$0 sm:$0xff] }
0x153f   :  { %1287 = vrot.lane.b32.xlu0 %v1285_v11, %s2546_s28  ;;  %v1205_v12 = vpop.permute.xlu0 %1204 }
0x1540   :  { %v1207_v13 = vmul.f32 %v2456_v57, %v1205_v12 }
0x1542   :  { %v1291_v14 = vrot.slane %v1207_v13, 2 }
0x1544   :  { %1292 = vrot.lane.b32.xlu1 %v1291_v14, %s2544_s30 }
0x15b1   :  { %v1288_v15 = vpop.permute.xlu0 %1287 }
0x15b6   :  { %v1293_v16 = vpop.permute.xlu1 %1292 }
0x15b7   :  { %v1295_v17 = vsel %vm189_vm2, %v1288_v15, %v1293_v16 }
0x15b8   :  { %v1296_v22 = vpack.c.bf16 %v1295_v17, %v1295_v17  ;;  %v2333_v17 = vld [vmem:[%s3156_s12 + $0x18] sm:$0xff]  }
0x15ba   :  { %v1298_v23 = vrot.slane %v1296_v22, 3 }
0x15bc   :  { %2234 = vmatmul.mubr.msk.bf16.vlgmr.msra.gmra.mrb[28].mxu1 %vm359_vm3, %v1298_v23  ;;  %v2334_v23 = vld [vmem:[%s3156_s12 + $0x20] sm:$0xff]  }
0x15bd   :  { %2257 = vmatprep.mubr.msk.bf16.mxu1 %vm2543_vm0, %v2542_v1  ;;  %2250 = vmatpush3.bf16.msra.mxu1 %v2326_v19 }
0x15be   :  { %2251 = vmatprep.subr.bf16.mxu1 %v2542_v1 }
0x15c1   :  { %2252 = vmatpush3.bf16.msra.mxu1 %v2327_v61 }
0x15c2   :  { %2253 = vmatprep.subr.bf16.mxu1 %v2542_v1 }
0x15c5   :  { %2254 = vmatpush3.bf16.msra.mxu1 %v2328_v21 }
0x15c6   :  { %2255 = vmatprep.subr.bf16.mxu1 %v2542_v1 }
0x15c9   :  { %2256 = vmatpush3.bf16.msra.mxu1 %v2329_v49  ;;  %v2337_v49 = vld [vmem:[%s3160_s16] sm:$0xff]  }
0x15ca   :  { %2275 = vmatprep.subr.bf16.mxu1 %v2542_v1 }
0x168f   :  { %v1336_v24 = vpop.f32.mrb[28].mxu1 }
0x1690   :  { %v1337_v26 = vadd.f32 %v2493_v25, %v1336_v24  ;;  %v2235_v28 = vpop.f32.mrb[29].mxu1  ;;  %v2335_v24 = vld [vmem:[%s3158_s14] sm:$0xff]  }
0x1691   :  { %v1339_v29 = vpop.f32.mrb[30].mxu1 }
0x1692   :  { %2461 = vtanh.f32 %v1337_v26  ;;  %v2236_v30 = vpop.f32.mrb[31].mxu1  ;;  %v1342_v36 = vsub.f32 0.0, %v1337_v26  ;;  %v1543_v26 = vld [vmem:[%s3178_s9] sm:$0x3] }
0x1694   :  { %v1343_v37 = vmul.f32 1.442695, %v1342_v36 }
0x1696   :  { %2463 = vpow2.f32 %v1343_v37 }
0x169c   :  { %v2462_v5 = vpop.eup %2461 }
0x169d   :  { %1350 = vrot.lane.b32.xlu0 %v2462_v5, %s2544_s30  ;;  %v2336_v5 = vld [vmem:[%s3158_s14 + $0x8] sm:$0xff]  }
0x16a0   :  { %v2464_v38 = vpop.eup %2463 }
0x16a1   :  { %v1345_v39 = vadd.f32 1.0, %v2464_v38 }
0x16a3   :  { %2465 = vrcp.f32 %v1345_v39 }
0x16ad   :  { %v2466_v40 = vpop.eup %2465 }
0x16ae   :  { %v1348_v47 = vmul.f32 %v2466_v40, %v1201_v6  ;;  %v2331_v6 = vld [vmem:[%s3156_s12 + $0x8] sm:$0xff]  }
0x16af   :  { %2264 = vmatpush3.bf16.msra.mxu0 %v2331_v6 }
0x16b0   :  { %2265 = vmatprep.subr.bf16.mxu0 %v2542_v1 }
0x16b3   :  { %2266 = vmatpush3.bf16.msra.mxu0 %v2332_v9  ;;  %v2339_v9 = vld [vmem:[%s3162_s18] sm:$0xff]  }
0x16b4   :  { %2267 = vmatprep.subr.bf16.mxu0 %v2542_v1 }
0x16b7   :  { %2268 = vmatpush3.bf16.msra.mxu0 %v2333_v17 }
0x16b8   :  { %2269 = vmatprep.subr.bf16.mxu0 %v2542_v1 }
0x16bb   :  { %2270 = vmatpush3.bf16.msra.mxu0 %v2334_v23 }
0x16bc   :  { %2283 = vmatprep.subr.bf16.mxu0 %v2542_v1 }
0x170f   :  { %v1351_v41 = vpop.permute.xlu0 %1350 }
0x1710   :  { %v1353_v42 = vmul.f32 %v2466_v40, %v1351_v41  ;;  %v1985_v41 = vld [vmem:[%s3159_s15] ss:$0 sm:$0xff] }
0x1712   :  { %1355 = vrot.lane.b32.xlu1 %v1353_v42, %s2546_s28 }
0x1784   :  { %v1356_v48 = vpop.permute.xlu1 %1355 }
0x1785   :  { %v1358_v18 = vadd.f32 %v1356_v48, %v1348_v47 }
0x1787   :  { %2467 = vtanh.f32 %v1358_v18 }
0x1791   :  { %v2468_v3 = vpop.eup %2467 }
0x1792   :  { %1361 = vrot.lane.b32.xlu0 %v2468_v3, %s2544_s30 }
0x1804   :  { %v1362_v52 = vpop.permute.xlu0 %1361 }
0x1805   :  { %v1364_v54 = vmul.f32 %v2466_v40, %v1362_v52 }
0x1807   :  { %v2309_v20 = vpack.i.bf16 %v1448_v8, %v1364_v54 }
0x1809   :  { %2310 = vrot.lane.b32.xlu1 %v2309_v20, %s2546_s28 }
0x180d   :  { %1569 = vrot.lane.b32.xlu1 %v1568_v7, %s2548_s1 }
0x187b   :  { %v2311_v27 = vpop.permute.xlu1 %2310 }
0x187c   :  { %v2313_v55 = vunpack.i.h.bf16 %v2311_v27  ;;  %v2312_v56 = vunpack.i.l.bf16 %v2311_v27 }
0x187e   :  { %v1457_v53 = vsel %vm189_vm2, %v2312_v56, %v2313_v55  ;;  %v1989_v55 = vld [vmem:[%s3161_s17] ss:$0 sm:$0xff] }
0x187f   :  { %v1458_v57 = vpack.c.bf16 %v1457_v53, %v1457_v53  ;;  %v1570_v31 = vpop.permute.xlu1 %1569 }
0x1881   :  { %2258 = vmatmul.mubr.msk.bf16.vlgmr.msra.gmra.mrb[32].mxu1 %vm359_vm3, %v1458_v57 }
0x1882   :  { %2279 = vmatprep.mubr.msk.bf16.mxu1 %vm2543_vm0, %v2542_v1  ;;  %2276 = vmatpush3.bf16.msra.mxu1 %v2335_v24 }
0x1883   :  { %2277 = vmatprep.subr.bf16.mxu1 %v2542_v1 }
0x1886   :  { %2278 = vmatpush3.bf16.msra.mxu1 %v2336_v5 }
0x1887   :  { %2291 = vmatprep.subr.bf16.mxu1 %v2542_v1 }
0x1954   :  { %v1535_v11 = vpop.f32.mrb[32].mxu1 }
0x1955   :  { %v1536_v12 = vadd.f32 %v1972_v10, %v1535_v11  ;;  %v2259_v13 = vpop.f32.mrb[33].mxu1  ;;  %v2340_v10 = vld [vmem:[%s3162_s18 + $0x8] sm:$0xff]  }
0x1956   :  { %v1538_v14 = vpop.f32.mrb[34].mxu1 }
0x1957   :  { %v1544_v15 = vmul.f32 0.5, %v1536_v12  ;;  %v2260_v16 = vpop.f32.mrb[35].mxu1  ;;  %1542 = vst.msk [vmem:[#allocation4] sm:$0x3] %vm1541_vm4, %v1536_v12 }
0x1959   :  { %v1545_v22 = vmul.f32 1.442695, %v1544_v15 }
0x195b   :  { %2469 = vpow2.f32 %v1545_v22 }
0x1965   :  { %v2470_v25 = vpop.eup %2469 }
0x1966   :  { %1548 = vrot.lane.b32.xlu0 %v2470_v25, %s2549_s4 }
0x19d8   :  { %v1549_v28 = vpop.permute.xlu0 %1548 }
0x19d9   :  { %v1551_v29 = vmul.f32 %v1549_v28, %v1543_v26 }
0x19db   :  { %v1552_v30 = vadd.f32 %v1551_v29, %v1536_v12 }
0x19dd   :  { %v1553_v32 = vpack.c.bf16 %v1552_v30, %v1552_v30 }
0x19df   :  { %v1573_v33 = vsel %vm92_vm1, %v1553_v32, %v1570_v31 }
0x19e0   :  { %2272 = vmatmul.mubr.msk.bf16.vlgmr.msra.gmra.mrb[36].mxu0 %vm1621_vm5, %v1573_v33 }
0x19e1   :  { %2287 = vmatprep.mubr.msk.bf16.mxu0 %vm2543_vm0, %v2542_v1  ;;  %2284 = vmatpush3.bf16.msra.mxu0 %v2337_v49 }
0x19e2   :  { %2285 = vmatprep.subr.bf16.mxu0 %v2542_v1 }
0x19e5   :  { %2286 = vmatpush3.bf16.msra.mxu0 %v2338_v51 }
0x1ab3   :  { %v1658_v35 = vpop.f32.mrb[36].mxu0 }
0x1ab4   :  { %v1659_v36 = vadd.f32 %v1978_v34, %v1658_v35  ;;  %v2273_v37 = vpop.f32.mrb[37].mxu0 }
0x1ab5   :  { %v1661_v38 = vpop.f32.mrb[38].mxu0 }
0x1ab6   :  { %v1664_v39 = vpack.c.bf16 %v1659_v36, %v1659_v36  ;;  %v2274_v40 = vpop.f32.mrb[39].mxu0 }
0x1ab8   :  { %2280 = vmatmul.mubr.msk.bf16.vlgmr.msra.gmra.mrb[36].mxu1 %vm189_vm2, %v1664_v39 }
0x1ab9   :  { %2295 = vmatprep.mubr.msk.bf16.mxu1 %vm2543_vm0, %v2542_v1  ;;  %2292 = vmatpush3.bf16.msra.mxu1 %v2339_v9 }
0x1aba   :  { %2293 = vmatprep.subr.bf16.mxu1 %v2542_v1 }
0x1abd   :  { %2294 = vmatpush3.bf16.msra.mxu1 %v2340_v10 }
0x1b8b   :  { %v1725_v42 = vpop.f32.mrb[36].mxu1 }
0x1b8c   :  { %v1726_v43 = vadd.f32 %v1985_v41, %v1725_v42  ;;  %v2281_v44 = vpop.f32.mrb[37].mxu1 }
0x1b8d   :  { %v1728_v45 = vpop.f32.mrb[38].mxu1 }
0x1b8e   :  { %2471 = vtanh.f32 %v1726_v43  ;;  %v2282_v46 = vpop.f32.mrb[39].mxu1  ;;  %v1731_v48 = vsub.f32 0.0, %v1726_v43 }
0x1b90   :  { %v1732_v18 = vmul.f32 1.442695, %v1731_v48 }
0x1b92   :  { %2473 = vpow2.f32 %v1732_v18 }
0x1b98   :  { %v2472_v47 = vpop.eup %2471 }
0x1b99   :  { %1738 = vrot.lane.b32.xlu0 %v2472_v47, %s2544_s30 }
0x1b9c   :  { %v2474_v19 = vpop.eup %2473 }
0x1b9d   :  { %v1734_v61 = vadd.f32 1.0, %v2474_v19 }
0x1b9f   :  { %2475 = vrcp.f32 %v1734_v61 }
0x1ba9   :  { %v2476_v21 = vpop.eup %2475 }
0x1c0b   :  { %v1739_v3 = vpop.permute.xlu0 %1738 }
0x1c0c   :  { %v1741_v50 = vmul.f32 %v2476_v21, %v1739_v3 }
0x1c0e   :  { %2477 = vtanh.f32 %v1741_v50 }
0x1c18   :  { %v2478_v8 = vpop.eup %2477 }
0x1c19   :  { %1744 = vrot.lane.b32.xlu1 %v2478_v8, %s2545_s3 }
0x1c8b   :  { %v1745_v52 = vpop.permute.xlu1 %1744 }
0x1c8c   :  { %v1747_v54 = vmul.f32 %v2476_v21, %v1745_v52 }
0x1c8e   :  { %v1748_v20 = vpack.c.bf16 %v1747_v54, %v1747_v54 }
0x1c90   :  { %1761 = vrot.lane.b32.xlu0 %v1748_v20, %s2546_s28 }
0x1d02   :  { %v1762_v27 = vpop.permute.xlu0 %1761 }
0x1d03   :  { %2288 = vmatmul.mubr.msk.bf16.vlgmr.msra.gmra.mrb[40].mxu0 %vm189_vm2, %v1762_v27 }
0x1dd6   :  { %v1812_v56 = vpop.f32.mrb[40].mxu0 }
0x1dd7   :  { %v1813_v53 = vadd.f32 %v1989_v55, %v1812_v56  ;;  %v2289_v57 = vpop.f32.mrb[41].mxu0 }
0x1dd8   :  { %v1815_v58 = vpop.f32.mrb[42].mxu0 }
0x1dd9   :  { %2479 = vtanh.f32 %v1813_v53  ;;  %v2290_v59 = vpop.f32.mrb[43].mxu0  ;;  %v1818_v62 = vsub.f32 0.0, %v1813_v53 }
0x1ddb   :  { %v1819_v63 = vmul.f32 1.442695, %v1818_v62 }
0x1ddd   :  { %2481 = vpow2.f32 %v1819_v63 }
0x1de3   :  { %v2480_v60 = vpop.eup %2479 }
0x1de4   :  { %1825 = vrot.lane.b32.xlu1 %v2480_v60, %s2544_s30  ;;  %s2550_s30 = smov [#allocation4]  }
0x1de5   :  { %s1928_s27 = sshll.u32 %s2550_s30, 4  ;;  %s1929_s27 = int_to_ptr.vmem [resolvable:$true] %s1928_s27 }
0x1de6   :  { %s2494_s29 = scalar_lea.vmem %s1929_s27, 32  ;;  %p2499_p1 = scmp.lt.s32.totalorder %s1929_s27, %s1929_s27 }
0x1de7   :  { %v2482_v0 = vpop.eup %2481  ;;  %p2495_p0 = scmp.ne.s32.totalorder %s1929_s27, %s2494_s29  ;;  %p2500_p2 = scmp.lt.s32.totalorder %s2494_s29, %s2494_s29 }
0x1de8   :  { %v1821_v2 = vadd.f32 1.0, %v2482_v0 }
0x1de9   :  { %p2501_p3 = por %p2500_p2, %p2499_p1 }
0x1dea   :  { %2483 = vrcp.f32 %v1821_v2 }
0x1deb   :  { %p2502_p4 = pnand %p2501_p3, %p2495_p0 }
0x1df4   :  { %v2484_v4 = vpop.eup %2483 }
0x1e56   :  { %v1826_v6 = vpop.permute.xlu1 %1825 }
0x1e57   :  { %v1828_v7 = vmul.f32 %v2484_v4, %v1826_v6 }
0x1e59   :  { %2485 = vtanh.f32 %v1828_v7 }
0x1e63   :  { %v2486_v11 = vpop.eup %2485 }
0x1e64   :  { %1831 = vrot.lane.b32.xlu0 %v2486_v11, %s2545_s3 }
0x1ed6   :  { %v1832_v12 = vpop.permute.xlu0 %1831 }
0x1ed7   :  { %v1834_v13 = vmul.f32 %v2484_v4, %v1832_v12 }
0x1ed9   :  { %v1835_v14 = vpack.c.bf16 %v1834_v13, %v1834_v13 }
0x1edb   :  { %1848 = vrot.lane.b32.xlu1 %v1835_v14, %s2546_s28 }
0x1f4d   :  { %v1849_v15 = vpop.permute.xlu1 %1848 }
0x1f4e   :  { %2296 = vmatmul.mubr.msk.bf16.vlgmr.msra.gmra.mrb[40].mxu1 %vm189_vm2, %v1849_v15 }
0x1f4f   :  { %2505 = shalt.err (!%p2502_p4)
}
0x1f50   :  { %s2506_s11 = scalar_lea.hbm %s3165_s21, 32 }
0x1f51   :  { %p2507_p5 = scmp.ne.s32.totalorder %s3165_s21, %s2506_s11  ;;  %p2510_p6 = scmp.lt.u32.totalorder %s2506_s11, %s3165_s21 }
0x1f53   :  { %p2512_p7 = pnand %p2510_p6, %p2507_p5 }
0x1f55   :  { %2515 = shalt.err (!%p2512_p7)
}
0x1f56   :  { %1931 = dma.vmem_to_hbm [thread:$0]  %s1929_s27, 32, %s3165_s21, [#allocation5]   ;;  %v1993_v1 = vld [vmem:[%s3163_s19] ss:$0 sm:$0xff]  ;;  %vm1910_vm6 = vcmask 517120  }
0x1f57   :  { %s2551_s7 = smov [#allocation2]  }
0x1f58   :  { %s1918_s23 = sshll.u32 %s2551_s7, 4  ;;  %s1919_s23 = int_to_ptr.vmem [resolvable:$true] %s1918_s23 }
0x1f59   :  { %s2516_s21 = scalar_lea.vmem %s1919_s23, 32  ;;  %p2521_p9 = scmp.lt.s32.totalorder %s1919_s23, %s1919_s23 }
0x1f5a   :  { %p2517_p8 = scmp.ne.s32.totalorder %s1919_s23, %s2516_s21  ;;  %p2522_p10 = scmp.lt.s32.totalorder %s2516_s21, %s2516_s21 }
0x1f5c   :  { %p2523_p11 = por %p2522_p10, %p2521_p9 }
0x1f5e   :  { %p2524_p12 = pnand %p2523_p11, %p2517_p8 }
0x2021   :  { %v1899_v16 = vpop.f32.mrb[40].mxu1 }
0x2022   :  { %v1900_v17 = vadd.f32 %v1993_v1, %v1899_v16  ;;  %v2297_v22 = vpop.f32.mrb[41].mxu1 }
0x2023   :  { %v1902_v23 = vpop.f32.mrb[42].mxu1 }
0x2024   :  { %v1905_v24 = vsub.f32 0.0, %v1900_v17  ;;  %v2298_v25 = vpop.f32.mrb[43].mxu1 }
0x2026   :  { %v1906_v26 = vmul.f32 1.442695, %v1905_v24 }
0x2028   :  { %2487 = vpow2.f32 %v1906_v26 }
0x2032   :  { %v2488_v28 = vpop.eup %2487 }
0x2033   :  { %v1908_v29 = vadd.f32 1.0, %v2488_v28 }
0x2035   :  { %2489 = vrcp.f32 %v1908_v29 }
0x203f   :  { %v2490_v30 = vpop.eup %2489 }
0x2040   :  { %1911 = vst.msk [vmem:[#allocation2] sm:$0x3] %vm1910_vm6, %v2490_v30 }
0x2041   :  { %2527 = shalt.err (!%p2524_p12)
}
0x2042   :  { %s2528_s14 = scalar_lea.hbm %s3164_s20, 32 }
0x2043   :  { %p2529_p13 = scmp.ne.s32.totalorder %s3164_s20, %s2528_s14  ;;  %p2532_p0 = scmp.lt.u32.totalorder %s2528_s14, %s3164_s20 }
0x2045   :  { %p2534_p1 = pnand %p2532_p0, %p2529_p13 }
0x2047   :  { %2537 = shalt.err (!%p2534_p1)
}
0x2048   :  { %1921 = dma.vmem_to_hbm [thread:$0]  %s1919_s23, 32, %s3164_s20, [#allocation3]  }
0x2049   :  { %2538 = dma.done.wait [#allocation3], 32  }
0x204a   :  { %2539 = vsyncadd [#allocation3], 4294967264 }
0x204b   :  { %2540 = dma.done.wait [#allocation5], 32  }
0x204c   :  { %2541 = vsyncadd [#allocation5], 4294967264 }
0x204d   :  { %1938 = vsyncpa [#allocation3], 1 }
0x204e   :  { %1939 = vsyncpa [#allocation5], 1 }

</bundles_post_ra>
